<compile_context>
chip_gen: v7x
topology: tpu7x:2x2x1
jax: 0.10.0
libtpu: 0.0.40
codegen_flags: <defaults>
</compile_context>

<pallas_src>
import jax
import jax.numpy as jnp
from jax import lax
from jax.experimental import pallas as pl
from jax.experimental.pallas import tpu as pltpu


def _scorer_kernel(seq_ref, struct_ref, w_ih_ref, w_hh_ref, b_lstm_ref,
                   w_s_ref, b_s_ref, w_c_seq_ref, w_c_struct_ref, b_c_ref,
                   out_ref, proj_ref):
    # seq_ref:        (T, Bt, D_seq)   time-major batch tile
    # struct_ref:     (Bt, D_struct)
    # w_ih_ref:       (D_seq, 4*Hp)    each gate zero-padded to Hp lanes
    # w_hh_ref:       (Hp, 4*Hp)
    # b_lstm_ref:     (1, 4*Hp)        b_ih + b_hh, gate-padded
    # w_s_ref:        (D_struct, Hp)
    # b_s_ref:        (1, Hp)
    # w_c_seq_ref:    (1, Hp)          first half of combine_fc.weight
    # w_c_struct_ref: (1, Hp)          second half of combine_fc.weight
    # b_c_ref:        (1, 1)
    # out_ref:        (Bt, 1)
    # proj_ref:       (T, Bt, 4*Hp)    VMEM scratch (hoisted input projection)
    T, Bt, Ds = seq_ref.shape
    Hp = w_hh_ref.shape[0]
    G = 4 * Hp

    # --- hoisted input projection: one big MXU pass for all timesteps -------
    x_flat = seq_ref[...].reshape(T * Bt, Ds)
    proj = jnp.dot(x_flat, w_ih_ref[...],
                   preferred_element_type=jnp.float32) + b_lstm_ref[...]
    proj_ref[...] = proj.reshape(T, Bt, G)

    # --- struct_fc issued before the recurrence (hides under first steps) ---
    struct_feat = (jnp.dot(struct_ref[...], w_s_ref[...],
                           preferred_element_type=jnp.float32) + b_s_ref[...])

    w_hh = w_hh_ref[...]

    def step(t, carry):
        h, c = carry
        gates = proj_ref[t] + jnp.dot(h, w_hh,
                                      preferred_element_type=jnp.float32)
        # PyTorch LSTM gate order (i, f, g, o); each gate occupies a full,
        # lane-aligned Hp-wide block (zero-padded lanes stay exactly 0).
        i_g = jax.nn.sigmoid(gates[:, 0 * Hp:1 * Hp])
        f_g = jax.nn.sigmoid(gates[:, 1 * Hp:2 * Hp])
        g_g = jnp.tanh(gates[:, 2 * Hp:3 * Hp])
        o_g = jax.nn.sigmoid(gates[:, 3 * Hp:4 * Hp])
        c_new = f_g * c + i_g * g_g
        h_new = o_g * jnp.tanh(c_new)
        return h_new, c_new

    h0 = jnp.zeros((Bt, Hp), jnp.float32)
    c0 = jnp.zeros((Bt, Hp), jnp.float32)
    h_last, _ = lax.fori_loop(0, T, step, (h0, c0), unroll=True)

    # --- combine_fc over concat([h_last, struct_feat]) as split dot-products,
    #     done as VPU multiply + lane reduction (avoids N=1 MXU passes).
    #     Dropout(p=0.5) -> identity (eval mode).
    out = (jnp.sum(h_last * w_c_seq_ref[...], axis=-1, keepdims=True)
           + jnp.sum(struct_feat * w_c_struct_ref[...], axis=-1, keepdims=True)
           + b_c_ref[...])
    out_ref[...] = out


def _round_up(x, m):
    return ((x + m - 1) // m) * m


def init_params(key, seq_input_size, struct_input_size, hidden_size):
    """Deterministic synthetic parameters, PyTorch-convention shapes."""
    ks = jax.random.split(key, 8)
    H = hidden_size
    s = 0.1
    return {
        "w_ih": s * jax.random.normal(ks[0], (4 * H, seq_input_size), jnp.float32),
        "w_hh": s * jax.random.normal(ks[1], (4 * H, H), jnp.float32),
        "b_ih": s * jax.random.normal(ks[2], (4 * H,), jnp.float32),
        "b_hh": s * jax.random.normal(ks[3], (4 * H,), jnp.float32),
        "w_struct": s * jax.random.normal(ks[4], (H, struct_input_size), jnp.float32),
        "b_struct": s * jax.random.normal(ks[5], (H,), jnp.float32),
        "w_combine": s * jax.random.normal(ks[6], (1, 2 * H), jnp.float32),
        "b_combine": s * jax.random.normal(ks[7], (1,), jnp.float32),
    }


def antibody_quality_scorer(seq, struct, params):
    """seq: (B, T, D_seq) batch-first (PyTorch convention); struct: (B, D_struct)."""
    B, T, D_seq = seq.shape
    D_struct = struct.shape[1]
    H = params["w_hh"].shape[1]
    f32 = jnp.float32

    # ---- lane/sublane-friendly padding -------------------------------------
    Hp = _round_up(H, 128)            # each gate block padded to a full lane tile
    G = 4 * Hp
    B_TILE = min(128, _round_up(B, 8))
    B_pad = _round_up(B, B_TILE)

    # Inputs: pad batch with zero rows, seq goes time-major.
    seq_p = jnp.zeros((B_pad, T, D_seq), f32).at[:B].set(seq.astype(f32))
    seq_tm = jnp.transpose(seq_p, (1, 0, 2))                     # (T, B_pad, D_seq)
    struct_p = jnp.zeros((B_pad, D_struct), f32).at[:B].set(struct.astype(f32))

    # LSTM weights: PyTorch (4H, in) -> transposed, each gate zero-padded to Hp.
    w_ih_t = params["w_ih"].T.astype(f32)                        # (D_seq, 4H)
    w_hh_t = params["w_hh"].T.astype(f32)                        # (H, 4H)
    b_lstm = (params["b_ih"] + params["b_hh"]).astype(f32)       # (4H,)

    w_ih_p = jnp.zeros((D_seq, G), f32)
    w_hh_p = jnp.zeros((Hp, G), f32)
    b_lstm_p = jnp.zeros((1, G), f32)
    for g in range(4):
        w_ih_p = w_ih_p.at[:, g * Hp:g * Hp + H].set(w_ih_t[:, g * H:(g + 1) * H])
        w_hh_p = w_hh_p.at[:H, g * Hp:g * Hp + H].set(w_hh_t[:, g * H:(g + 1) * H])
        b_lstm_p = b_lstm_p.at[:, g * Hp:g * Hp + H].set(
            b_lstm[g * H:(g + 1) * H][None, :])

    w_s_p = jnp.zeros((D_struct, Hp), f32).at[:, :H].set(
        params["w_struct"].T.astype(f32))
    b_s_p = jnp.zeros((1, Hp), f32).at[:, :H].set(
        params["b_struct"].astype(f32)[None, :])

    w_c = params["w_combine"].astype(f32)                        # (1, 2H)
    w_c_seq = jnp.zeros((1, Hp), f32).at[:, :H].set(w_c[:, :H])
    w_c_struct = jnp.zeros((1, Hp), f32).at[:, :H].set(w_c[:, H:])
    b_c = params["b_combine"].astype(f32).reshape(1, 1)

    grid = (B_pad // B_TILE,)

    def full(shape):
        return pl.BlockSpec(shape, lambda b, _s=shape: tuple(0 for _ in _s))

    out = pl.pallas_call(
        _scorer_kernel,
        out_shape=jax.ShapeDtypeStruct((B_pad, 1), f32),
        grid=grid,
        in_specs=[
            pl.BlockSpec((T, B_TILE, D_seq), lambda b: (0, b, 0)),   # seq tile
            pl.BlockSpec((B_TILE, D_struct), lambda b: (b, 0)),      # struct tile
            full((D_seq, G)),        # w_ih
            full((Hp, G)),           # w_hh
            full((1, G)),            # b_lstm
            full((D_struct, Hp)),    # w_struct
            full((1, Hp)),           # b_struct
            full((1, Hp)),           # w_combine (seq half)
            full((1, Hp)),           # w_combine (struct half)
            full((1, 1)),            # b_combine
        ],
        out_specs=pl.BlockSpec((B_TILE, 1), lambda b: (b, 0)),
        scratch_shapes=[pltpu.VMEM((T, B_TILE, G), jnp.float32)],
        compiler_params=pltpu.CompilerParams(
            dimension_semantics=("parallel",),
            vmem_limit_bytes=32 * 1024 * 1024,
        ),
    )(seq_tm, struct_p, w_ih_p, w_hh_p, b_lstm_p,
      w_s_p, b_s_p, w_c_seq, w_c_struct, b_c)

    return jnp.squeeze(out[:B])   # matches PyTorch output.squeeze()


def _reference(seq, struct, params):
    """Pure-JAX reference of the PyTorch forward (eval mode)."""
    B, T, _ = seq.shape
    H = params["w_hh"].shape[1]
    h = jnp.zeros((B, H), jnp.float32)
    c = jnp.zeros((B, H), jnp.float32)
    for t in range(T):
        x_t = seq[:, t, :]
        gates = (x_t @ params["w_ih"].T + params["b_ih"]
                 + h @ params["w_hh"].T + params["b_hh"])
        i_g = jax.nn.sigmoid(gates[:, 0:H])
        f_g = jax.nn.sigmoid(gates[:, H:2 * H])
        g_g = jnp.tanh(gates[:, 2 * H:3 * H])
        o_g = jax.nn.sigmoid(gates[:, 3 * H:4 * H])
        c = f_g * c + i_g * g_g
        h = o_g * jnp.tanh(c)
    struct_feat = struct @ params["w_struct"].T + params["b_struct"]
    combined = jnp.concatenate([h, struct_feat], axis=1)
    out = combined @ params["w_combine"].T + params["b_combine"]
    return jnp.squeeze(out)


if __name__ == "__main__":
    B, T = 2, 8
    SEQ_IN, STRUCT_IN, HIDDEN = 16, 12, 32

    key = jax.random.PRNGKey(0)
    k_seq, k_struct, k_params = jax.random.split(key, 3)
    seq = jax.random.normal(k_seq, (B, T, SEQ_IN), jnp.float32)
    struct = jax.random.normal(k_struct, (B, STRUCT_IN), jnp.float32)
    params = init_params(k_params, SEQ_IN, STRUCT_IN, HIDDEN)

    out = antibody_quality_scorer(seq, struct, params)
    out = jax.block_until_ready(out)

    ref = _reference(seq, struct, params)
    assert out.shape == ref.shape == (B,)
    assert jnp.allclose(out, ref, atol=1e-4, rtol=1e-4), (out, ref)
    print("KERNEL_OK")
</pallas_src>

<mosaic_0001>
module attributes {stable_mosaic.version = 11 : i64} {
  func.func @_scorer_kernel(%arg0: i32, %arg1: memref<8x8x16xf32, #tpu.memory_space<vmem>>, %arg2: memref<8x12xf32, #tpu.memory_space<vmem>>, %arg3: memref<16x512xf32, #tpu.memory_space<vmem>>, %arg4: memref<128x512xf32, #tpu.memory_space<vmem>>, %arg5: memref<1x512xf32, #tpu.memory_space<vmem>>, %arg6: memref<12x128xf32, #tpu.memory_space<vmem>>, %arg7: memref<1x128xf32, #tpu.memory_space<vmem>>, %arg8: memref<1x128xf32, #tpu.memory_space<vmem>>, %arg9: memref<1x128xf32, #tpu.memory_space<vmem>>, %arg10: memref<1x1xf32, #tpu.memory_space<vmem>>, %arg11: memref<8x1xf32, #tpu.memory_space<vmem>>, %arg12: memref<8x8x512xf32, #tpu.memory_space<vmem>>) attributes {dimension_semantics = [#tpu.dimension_semantics<parallel>], iteration_bounds = array<i64: 1>, scalar_prefetch = 0 : i64, scratch_operands = 1 : i64, tpu.core_type = #tpu.core_type<tc>, window_params = [{transform_indices = @transform_0, window_bounds = array<i64: 8, 8, 16>}, {transform_indices = @transform_1, window_bounds = array<i64: 8, 12>}, {pipeline_mode = #tpu.pipeline_mode<synchronous>, transform_indices = @transform_2, window_bounds = array<i64: 16, 512>}, {pipeline_mode = #tpu.pipeline_mode<synchronous>, transform_indices = @transform_3, window_bounds = array<i64: 128, 512>}, {pipeline_mode = #tpu.pipeline_mode<synchronous>, transform_indices = @transform_4, window_bounds = array<i64: 1, 512>}, {pipeline_mode = #tpu.pipeline_mode<synchronous>, transform_indices = @transform_5, window_bounds = array<i64: 12, 128>}, {pipeline_mode = #tpu.pipeline_mode<synchronous>, transform_indices = @transform_6, window_bounds = array<i64: 1, 128>}, {pipeline_mode = #tpu.pipeline_mode<synchronous>, transform_indices = @transform_7, window_bounds = array<i64: 1, 128>}, {pipeline_mode = #tpu.pipeline_mode<synchronous>, transform_indices = @transform_8, window_bounds = array<i64: 1, 128>}, {pipeline_mode = #tpu.pipeline_mode<synchronous>, transform_indices = @transform_9, window_bounds = array<i64: 1, 1>}, {transform_indices = @transform_10, window_bounds = array<i64: 8, 1>}]} {
    %c0 = arith.constant 0 : index
    %c0_0 = arith.constant 0 : index
    %c0_1 = arith.constant 0 : index
    %0 = vector.load %arg1[%c0, %c0_0, %c0_1] : memref<8x8x16xf32, #tpu.memory_space<vmem>>, vector<8x8x16xf32>
    %1 = vector.shape_cast %0 : vector<8x8x16xf32> to vector<64x16xf32>
    %c0_2 = arith.constant 0 : index
    %c0_3 = arith.constant 0 : index
    %2 = vector.load %arg3[%c0_2, %c0_3] : memref<16x512xf32, #tpu.memory_space<vmem>>, vector<16x512xf32>
    %cst = arith.constant dense<0.000000e+00> : vector<64x512xf32>
    %3 = tpu.matmul %1, %2, %cst {dimension_numbers = #tpu.dot_dimension_numbers<[1], [0], [0], [1], [0, 0, 1, 1], [], []>} : vector<64x16xf32>, vector<16x512xf32>, vector<64x512xf32> -> vector<64x512xf32>
    %c0_4 = arith.constant 0 : index
    %c0_5 = arith.constant 0 : index
    %4 = vector.load %arg5[%c0_4, %c0_5] : memref<1x512xf32, #tpu.memory_space<vmem>>, vector<1x512xf32>
    %5 = vector.broadcast %4 : vector<1x512xf32> to vector<64x512xf32>
    %6 = arith.addf %3, %5 : vector<64x512xf32>
    %7 = vector.shape_cast %6 : vector<64x512xf32> to vector<8x8x512xf32>
    %c0_6 = arith.constant 0 : index
    %c0_7 = arith.constant 0 : index
    %c0_8 = arith.constant 0 : index
    %8 = vector.load %arg12[%c0_6, %c0_7, %c0_8] : memref<8x8x512xf32, #tpu.memory_space<vmem>>, vector<8x8x512xf32>
    tpu.vector_store %arg12[%c0_6, %c0_7, %c0_8], %7 {strides = array<i32>} : memref<8x8x512xf32, #tpu.memory_space<vmem>>, vector<8x8x512xf32>,
    %c0_9 = arith.constant 0 : index
    %c0_10 = arith.constant 0 : index
    %9 = vector.load %arg2[%c0_9, %c0_10] : memref<8x12xf32, #tpu.memory_space<vmem>>, vector<8x12xf32>
    %c0_11 = arith.constant 0 : index
    %c0_12 = arith.constant 0 : index
    %10 = vector.load %arg6[%c0_11, %c0_12] : memref<12x128xf32, #tpu.memory_space<vmem>>, vector<12x128xf32>
    %cst_13 = arith.constant dense<0.000000e+00> : vector<8x128xf32>
    %11 = tpu.matmul %9, %10, %cst_13 {dimension_numbers = #tpu.dot_dimension_numbers<[1], [0], [0], [1], [0, 0, 1, 1], [], []>} : vector<8x12xf32>, vector<12x128xf32>, vector<8x128xf32> -> vector<8x128xf32>
    %c0_14 = arith.constant 0 : index
    %c0_15 = arith.constant 0 : index
    %12 = vector.load %arg7[%c0_14, %c0_15] : memref<1x128xf32, #tpu.memory_space<vmem>>, vector<1x128xf32>
    %13 = vector.broadcast %12 : vector<1x128xf32> to vector<8x128xf32>
    %14 = arith.addf %11, %13 : vector<8x128xf32>
    %c0_16 = arith.constant 0 : index
    %c0_17 = arith.constant 0 : index
    %15 = vector.load %arg4[%c0_16, %c0_17] : memref<128x512xf32, #tpu.memory_space<vmem>>, vector<128x512xf32>
    %cst_18 = arith.constant 0.000000e+00 : f32
    %16 = vector.broadcast %cst_18 : f32 to vector<8x128xf32>
    %cst_19 = arith.constant 0.000000e+00 : f32
    %17 = vector.broadcast %cst_19 : f32 to vector<8x128xf32>
    %c0_i32 = arith.constant 0 : i32
    %18 = arith.index_cast %c0_i32 : i32 to index
    %c0_20 = arith.constant 0 : index
    %c0_21 = arith.constant 0 : index
    %19 = vector.load %arg12[%18, %c0_20, %c0_21] : memref<8x8x512xf32, #tpu.memory_space<vmem>>, vector<1x8x512xf32>
    %20 = vector.shape_cast %19 : vector<1x8x512xf32> to vector<8x512xf32>
    %cst_22 = arith.constant dense<0.000000e+00> : vector<8x512xf32>
    %21 = tpu.matmul %16, %15, %cst_22 {dimension_numbers = #tpu.dot_dimension_numbers<[1], [0], [0], [1], [0, 0, 1, 1], [], []>} : vector<8x128xf32>, vector<128x512xf32>, vector<8x512xf32> -> vector<8x512xf32>
    %22 = arith.addf %20, %21 : vector<8x512xf32>
    %23 = vector.extract_strided_slice %22 {offsets = [0, 0], sizes = [8, 128], strides = [1, 1]} : vector<8x512xf32> to vector<8x128xf32>
    %24 = arith.negf %23 : vector<8x128xf32>
    %25 = math.exp %24 : vector<8x128xf32>
    %cst_23 = arith.constant 1.000000e+00 : f32
    %26 = vector.broadcast %cst_23 : f32 to vector<8x128xf32>
    %27 = arith.addf %26, %25 : vector<8x128xf32>
    %28 = arith.divf %26, %27 : vector<8x128xf32>
    %29 = vector.extract_strided_slice %22 {offsets = [0, 128], sizes = [8, 128], strides = [1, 1]} : vector<8x512xf32> to vector<8x128xf32>
    %30 = arith.negf %29 : vector<8x128xf32>
    %31 = math.exp %30 : vector<8x128xf32>
    %cst_24 = arith.constant 1.000000e+00 : f32
    %32 = vector.broadcast %cst_24 : f32 to vector<8x128xf32>
    %33 = arith.addf %32, %31 : vector<8x128xf32>
    %34 = arith.divf %32, %33 : vector<8x128xf32>
    %35 = vector.extract_strided_slice %22 {offsets = [0, 256], sizes = [8, 128], strides = [1, 1]} : vector<8x512xf32> to vector<8x128xf32>
    %36 = math.tanh %35 : vector<8x128xf32>
    %37 = vector.extract_strided_slice %22 {offsets = [0, 384], sizes = [8, 128], strides = [1, 1]} : vector<8x512xf32> to vector<8x128xf32>
    %38 = arith.negf %37 : vector<8x128xf32>
    %39 = math.exp %38 : vector<8x128xf32>
    %cst_25 = arith.constant 1.000000e+00 : f32
    %40 = vector.broadcast %cst_25 : f32 to vector<8x128xf32>
    %41 = arith.addf %40, %39 : vector<8x128xf32>
    %42 = arith.divf %40, %41 : vector<8x128xf32>
    %43 = arith.mulf %34, %17 : vector<8x128xf32>
    %44 = arith.mulf %28, %36 : vector<8x128xf32>
    %45 = arith.addf %43, %44 : vector<8x128xf32>
    %46 = math.tanh %45 : vector<8x128xf32>
    %47 = arith.mulf %42, %46 : vector<8x128xf32>
    %c1_i32 = arith.constant 1 : i32
    %48 = arith.index_cast %c1_i32 : i32 to index
    %c0_26 = arith.constant 0 : index
    %c0_27 = arith.constant 0 : index
    %49 = vector.load %arg12[%48, %c0_26, %c0_27] : memref<8x8x512xf32, #tpu.memory_space<vmem>>, vector<1x8x512xf32>
    %50 = vector.shape_cast %49 : vector<1x8x512xf32> to vector<8x512xf32>
    %cst_28 = arith.constant dense<0.000000e+00> : vector<8x512xf32>
    %51 = tpu.matmul %47, %15, %cst_28 {dimension_numbers = #tpu.dot_dimension_numbers<[1], [0], [0], [1], [0, 0, 1, 1], [], []>} : vector<8x128xf32>, vector<128x512xf32>, vector<8x512xf32> -> vector<8x512xf32>
    %52 = arith.addf %50, %51 : vector<8x512xf32>
    %53 = vector.extract_strided_slice %52 {offsets = [0, 0], sizes = [8, 128], strides = [1, 1]} : vector<8x512xf32> to vector<8x128xf32>
    %54 = arith.negf %53 : vector<8x128xf32>
    %55 = math.exp %54 : vector<8x128xf32>
    %cst_29 = arith.constant 1.000000e+00 : f32
    %56 = vector.broadcast %cst_29 : f32 to vector<8x128xf32>
    %57 = arith.addf %56, %55 : vector<8x128xf32>
    %58 = arith.divf %56, %57 : vector<8x128xf32>
    %59 = vector.extract_strided_slice %52 {offsets = [0, 128], sizes = [8, 128], strides = [1, 1]} : vector<8x512xf32> to vector<8x128xf32>
    %60 = arith.negf %59 : vector<8x128xf32>
    %61 = math.exp %60 : vector<8x128xf32>
    %cst_30 = arith.constant 1.000000e+00 : f32
    %62 = vector.broadcast %cst_30 : f32 to vector<8x128xf32>
    %63 = arith.addf %62, %61 : vector<8x128xf32>
    %64 = arith.divf %62, %63 : vector<8x128xf32>
    %65 = vector.extract_strided_slice %52 {offsets = [0, 256], sizes = [8, 128], strides = [1, 1]} : vector<8x512xf32> to vector<8x128xf32>
    %66 = math.tanh %65 : vector<8x128xf32>
    %67 = vector.extract_strided_slice %52 {offsets = [0, 384], sizes = [8, 128], strides = [1, 1]} : vector<8x512xf32> to vector<8x128xf32>
    %68 = arith.negf %67 : vector<8x128xf32>
    %69 = math.exp %68 : vector<8x128xf32>
    %cst_31 = arith.constant 1.000000e+00 : f32
    %70 = vector.broadcast %cst_31 : f32 to vector<8x128xf32>
    %71 = arith.addf %70, %69 : vector<8x128xf32>
    %72 = arith.divf %70, %71 : vector<8x128xf32>
    %73 = arith.mulf %64, %45 : vector<8x128xf32>
    %74 = arith.mulf %58, %66 : vector<8x128xf32>
    %75 = arith.addf %73, %74 : vector<8x128xf32>
    %76 = math.tanh %75 : vector<8x128xf32>
    %77 = arith.mulf %72, %76 : vector<8x128xf32>
    %c2_i32 = arith.constant 2 : i32
    %78 = arith.index_cast %c2_i32 : i32 to index
    %c0_32 = arith.constant 0 : index
    %c0_33 = arith.constant 0 : index
    %79 = vector.load %arg12[%78, %c0_32, %c0_33] : memref<8x8x512xf32, #tpu.memory_space<vmem>>, vector<1x8x512xf32>
    %80 = vector.shape_cast %79 : vector<1x8x512xf32> to vector<8x512xf32>
    %cst_34 = arith.constant dense<0.000000e+00> : vector<8x512xf32>
    %81 = tpu.matmul %77, %15, %cst_34 {dimension_numbers = #tpu.dot_dimension_numbers<[1], [0], [0], [1], [0, 0, 1, 1], [], []>} : vector<8x128xf32>, vector<128x512xf32>, vector<8x512xf32> -> vector<8x512xf32>
    %82 = arith.addf %80, %81 : vector<8x512xf32>
    %83 = vector.extract_strided_slice %82 {offsets = [0, 0], sizes = [8, 128], strides = [1, 1]} : vector<8x512xf32> to vector<8x128xf32>
    %84 = arith.negf %83 : vector<8x128xf32>
    %85 = math.exp %84 : vector<8x128xf32>
    %cst_35 = arith.constant 1.000000e+00 : f32
    %86 = vector.broadcast %cst_35 : f32 to vector<8x128xf32>
    %87 = arith.addf %86, %85 : vector<8x128xf32>
    %88 = arith.divf %86, %87 : vector<8x128xf32>
    %89 = vector.extract_strided_slice %82 {offsets = [0, 128], sizes = [8, 128], strides = [1, 1]} : vector<8x512xf32> to vector<8x128xf32>
    %90 = arith.negf %89 : vector<8x128xf32>
    %91 = math.exp %90 : vector<8x128xf32>
    %cst_36 = arith.constant 1.000000e+00 : f32
    %92 = vector.broadcast %cst_36 : f32 to vector<8x128xf32>
    %93 = arith.addf %92, %91 : vector<8x128xf32>
    %94 = arith.divf %92, %93 : vector<8x128xf32>
    %95 = vector.extract_strided_slice %82 {offsets = [0, 256], sizes = [8, 128], strides = [1, 1]} : vector<8x512xf32> to vector<8x128xf32>
    %96 = math.tanh %95 : vector<8x128xf32>
    %97 = vector.extract_strided_slice %82 {offsets = [0, 384], sizes = [8, 128], strides = [1, 1]} : vector<8x512xf32> to vector<8x128xf32>
    %98 = arith.negf %97 : vector<8x128xf32>
    %99 = math.exp %98 : vector<8x128xf32>
    %cst_37 = arith.constant 1.000000e+00 : f32
    %100 = vector.broadcast %cst_37 : f32 to vector<8x128xf32>
    %101 = arith.addf %100, %99 : vector<8x128xf32>
    %102 = arith.divf %100, %101 : vector<8x128xf32>
    %103 = arith.mulf %94, %75 : vector<8x128xf32>
    %104 = arith.mulf %88, %96 : vector<8x128xf32>
    %105 = arith.addf %103, %104 : vector<8x128xf32>
    %106 = math.tanh %105 : vector<8x128xf32>
    %107 = arith.mulf %102, %106 : vector<8x128xf32>
    %c3_i32 = arith.constant 3 : i32
    %108 = arith.index_cast %c3_i32 : i32 to index
    %c0_38 = arith.constant 0 : index
    %c0_39 = arith.constant 0 : index
    %109 = vector.load %arg12[%108, %c0_38, %c0_39] : memref<8x8x512xf32, #tpu.memory_space<vmem>>, vector<1x8x512xf32>
    %110 = vector.shape_cast %109 : vector<1x8x512xf32> to vector<8x512xf32>
    %cst_40 = arith.constant dense<0.000000e+00> : vector<8x512xf32>
    %111 = tpu.matmul %107, %15, %cst_40 {dimension_numbers = #tpu.dot_dimension_numbers<[1], [0], [0], [1], [0, 0, 1, 1], [], []>} : vector<8x128xf32>, vector<128x512xf32>, vector<8x512xf32> -> vector<8x512xf32>
    %112 = arith.addf %110, %111 : vector<8x512xf32>
    %113 = vector.extract_strided_slice %112 {offsets = [0, 0], sizes = [8, 128], strides = [1, 1]} : vector<8x512xf32> to vector<8x128xf32>
    %114 = arith.negf %113 : vector<8x128xf32>
    %115 = math.exp %114 : vector<8x128xf32>
    %cst_41 = arith.constant 1.000000e+00 : f32
    %116 = vector.broadcast %cst_41 : f32 to vector<8x128xf32>
    %117 = arith.addf %116, %115 : vector<8x128xf32>
    %118 = arith.divf %116, %117 : vector<8x128xf32>
    %119 = vector.extract_strided_slice %112 {offsets = [0, 128], sizes = [8, 128], strides = [1, 1]} : vector<8x512xf32> to vector<8x128xf32>
    %120 = arith.negf %119 : vector<8x128xf32>
    %121 = math.exp %120 : vector<8x128xf32>
    %cst_42 = arith.constant 1.000000e+00 : f32
    %122 = vector.broadcast %cst_42 : f32 to vector<8x128xf32>
    %123 = arith.addf %122, %121 : vector<8x128xf32>
    %124 = arith.divf %122, %123 : vector<8x128xf32>
    %125 = vector.extract_strided_slice %112 {offsets = [0, 256], sizes = [8, 128], strides = [1, 1]} : vector<8x512xf32> to vector<8x128xf32>
    %126 = math.tanh %125 : vector<8x128xf32>
    %127 = vector.extract_strided_slice %112 {offsets = [0, 384], sizes = [8, 128], strides = [1, 1]} : vector<8x512xf32> to vector<8x128xf32>
    %128 = arith.negf %127 : vector<8x128xf32>
    %129 = math.exp %128 : vector<8x128xf32>
    %cst_43 = arith.constant 1.000000e+00 : f32
    %130 = vector.broadcast %cst_43 : f32 to vector<8x128xf32>
    %131 = arith.addf %130, %129 : vector<8x128xf32>
    %132 = arith.divf %130, %131 : vector<8x128xf32>
    %133 = arith.mulf %124, %105 : vector<8x128xf32>
    %134 = arith.mulf %118, %126 : vector<8x128xf32>
    %135 = arith.addf %133, %134 : vector<8x128xf32>
    %136 = math.tanh %135 : vector<8x128xf32>
    %137 = arith.mulf %132, %136 : vector<8x128xf32>
    %c4_i32 = arith.constant 4 : i32
    %138 = arith.index_cast %c4_i32 : i32 to index
    %c0_44 = arith.constant 0 : index
    %c0_45 = arith.constant 0 : index
    %139 = vector.load %arg12[%138, %c0_44, %c0_45] : memref<8x8x512xf32, #tpu.memory_space<vmem>>, vector<1x8x512xf32>
    %140 = vector.shape_cast %139 : vector<1x8x512xf32> to vector<8x512xf32>
    %cst_46 = arith.constant dense<0.000000e+00> : vector<8x512xf32>
    %141 = tpu.matmul %137, %15, %cst_46 {dimension_numbers = #tpu.dot_dimension_numbers<[1], [0], [0], [1], [0, 0, 1, 1], [], []>} : vector<8x128xf32>, vector<128x512xf32>, vector<8x512xf32> -> vector<8x512xf32>
    %142 = arith.addf %140, %141 : vector<8x512xf32>
    %143 = vector.extract_strided_slice %142 {offsets = [0, 0], sizes = [8, 128], strides = [1, 1]} : vector<8x512xf32> to vector<8x128xf32>
    %144 = arith.negf %143 : vector<8x128xf32>
    %145 = math.exp %144 : vector<8x128xf32>
    %cst_47 = arith.constant 1.000000e+00 : f32
    %146 = vector.broadcast %cst_47 : f32 to vector<8x128xf32>
    %147 = arith.addf %146, %145 : vector<8x128xf32>
    %148 = arith.divf %146, %147 : vector<8x128xf32>
    %149 = vector.extract_strided_slice %142 {offsets = [0, 128], sizes = [8, 128], strides = [1, 1]} : vector<8x512xf32> to vector<8x128xf32>
    %150 = arith.negf %149 : vector<8x128xf32>
    %151 = math.exp %150 : vector<8x128xf32>
    %cst_48 = arith.constant 1.000000e+00 : f32
    %152 = vector.broadcast %cst_48 : f32 to vector<8x128xf32>
    %153 = arith.addf %152, %151 : vector<8x128xf32>
    %154 = arith.divf %152, %153 : vector<8x128xf32>
    %155 = vector.extract_strided_slice %142 {offsets = [0, 256], sizes = [8, 128], strides = [1, 1]} : vector<8x512xf32> to vector<8x128xf32>
    %156 = math.tanh %155 : vector<8x128xf32>
    %157 = vector.extract_strided_slice %142 {offsets = [0, 384], sizes = [8, 128], strides = [1, 1]} : vector<8x512xf32> to vector<8x128xf32>
    %158 = arith.negf %157 : vector<8x128xf32>
    %159 = math.exp %158 : vector<8x128xf32>
    %cst_49 = arith.constant 1.000000e+00 : f32
    %160 = vector.broadcast %cst_49 : f32 to vector<8x128xf32>
    %161 = arith.addf %160, %159 : vector<8x128xf32>
    %162 = arith.divf %160, %161 : vector<8x128xf32>
    %163 = arith.mulf %154, %135 : vector<8x128xf32>
    %164 = arith.mulf %148, %156 : vector<8x128xf32>
    %165 = arith.addf %163, %164 : vector<8x128xf32>
    %166 = math.tanh %165 : vector<8x128xf32>
    %167 = arith.mulf %162, %166 : vector<8x128xf32>
    %c5_i32 = arith.constant 5 : i32
    %168 = arith.index_cast %c5_i32 : i32 to index
    %c0_50 = arith.constant 0 : index
    %c0_51 = arith.constant 0 : index
    %169 = vector.load %arg12[%168, %c0_50, %c0_51] : memref<8x8x512xf32, #tpu.memory_space<vmem>>, vector<1x8x512xf32>
    %170 = vector.shape_cast %169 : vector<1x8x512xf32> to vector<8x512xf32>
    %cst_52 = arith.constant dense<0.000000e+00> : vector<8x512xf32>
    %171 = tpu.matmul %167, %15, %cst_52 {dimension_numbers = #tpu.dot_dimension_numbers<[1], [0], [0], [1], [0, 0, 1, 1], [], []>} : vector<8x128xf32>, vector<128x512xf32>, vector<8x512xf32> -> vector<8x512xf32>
    %172 = arith.addf %170, %171 : vector<8x512xf32>
    %173 = vector.extract_strided_slice %172 {offsets = [0, 0], sizes = [8, 128], strides = [1, 1]} : vector<8x512xf32> to vector<8x128xf32>
    %174 = arith.negf %173 : vector<8x128xf32>
    %175 = math.exp %174 : vector<8x128xf32>
    %cst_53 = arith.constant 1.000000e+00 : f32
    %176 = vector.broadcast %cst_53 : f32 to vector<8x128xf32>
    %177 = arith.addf %176, %175 : vector<8x128xf32>
    %178 = arith.divf %176, %177 : vector<8x128xf32>
    %179 = vector.extract_strided_slice %172 {offsets = [0, 128], sizes = [8, 128], strides = [1, 1]} : vector<8x512xf32> to vector<8x128xf32>
    %180 = arith.negf %179 : vector<8x128xf32>
    %181 = math.exp %180 : vector<8x128xf32>
    %cst_54 = arith.constant 1.000000e+00 : f32
    %182 = vector.broadcast %cst_54 : f32 to vector<8x128xf32>
    %183 = arith.addf %182, %181 : vector<8x128xf32>
    %184 = arith.divf %182, %183 : vector<8x128xf32>
    %185 = vector.extract_strided_slice %172 {offsets = [0, 256], sizes = [8, 128], strides = [1, 1]} : vector<8x512xf32> to vector<8x128xf32>
    %186 = math.tanh %185 : vector<8x128xf32>
    %187 = vector.extract_strided_slice %172 {offsets = [0, 384], sizes = [8, 128], strides = [1, 1]} : vector<8x512xf32> to vector<8x128xf32>
    %188 = arith.negf %187 : vector<8x128xf32>
    %189 = math.exp %188 : vector<8x128xf32>
    %cst_55 = arith.constant 1.000000e+00 : f32
    %190 = vector.broadcast %cst_55 : f32 to vector<8x128xf32>
    %191 = arith.addf %190, %189 : vector<8x128xf32>
    %192 = arith.divf %190, %191 : vector<8x128xf32>
    %193 = arith.mulf %184, %165 : vector<8x128xf32>
    %194 = arith.mulf %178, %186 : vector<8x128xf32>
    %195 = arith.addf %193, %194 : vector<8x128xf32>
    %196 = math.tanh %195 : vector<8x128xf32>
    %197 = arith.mulf %192, %196 : vector<8x128xf32>
    %c6_i32 = arith.constant 6 : i32
    %198 = arith.index_cast %c6_i32 : i32 to index
    %c0_56 = arith.constant 0 : index
    %c0_57 = arith.constant 0 : index
    %199 = vector.load %arg12[%198, %c0_56, %c0_57] : memref<8x8x512xf32, #tpu.memory_space<vmem>>, vector<1x8x512xf32>
    %200 = vector.shape_cast %199 : vector<1x8x512xf32> to vector<8x512xf32>
    %cst_58 = arith.constant dense<0.000000e+00> : vector<8x512xf32>
    %201 = tpu.matmul %197, %15, %cst_58 {dimension_numbers = #tpu.dot_dimension_numbers<[1], [0], [0], [1], [0, 0, 1, 1], [], []>} : vector<8x128xf32>, vector<128x512xf32>, vector<8x512xf32> -> vector<8x512xf32>
    %202 = arith.addf %200, %201 : vector<8x512xf32>
    %203 = vector.extract_strided_slice %202 {offsets = [0, 0], sizes = [8, 128], strides = [1, 1]} : vector<8x512xf32> to vector<8x128xf32>
    %204 = arith.negf %203 : vector<8x128xf32>
    %205 = math.exp %204 : vector<8x128xf32>
    %cst_59 = arith.constant 1.000000e+00 : f32
    %206 = vector.broadcast %cst_59 : f32 to vector<8x128xf32>
    %207 = arith.addf %206, %205 : vector<8x128xf32>
    %208 = arith.divf %206, %207 : vector<8x128xf32>
    %209 = vector.extract_strided_slice %202 {offsets = [0, 128], sizes = [8, 128], strides = [1, 1]} : vector<8x512xf32> to vector<8x128xf32>
    %210 = arith.negf %209 : vector<8x128xf32>
    %211 = math.exp %210 : vector<8x128xf32>
    %cst_60 = arith.constant 1.000000e+00 : f32
    %212 = vector.broadcast %cst_60 : f32 to vector<8x128xf32>
    %213 = arith.addf %212, %211 : vector<8x128xf32>
    %214 = arith.divf %212, %213 : vector<8x128xf32>
    %215 = vector.extract_strided_slice %202 {offsets = [0, 256], sizes = [8, 128], strides = [1, 1]} : vector<8x512xf32> to vector<8x128xf32>
    %216 = math.tanh %215 : vector<8x128xf32>
    %217 = vector.extract_strided_slice %202 {offsets = [0, 384], sizes = [8, 128], strides = [1, 1]} : vector<8x512xf32> to vector<8x128xf32>
    %218 = arith.negf %217 : vector<8x128xf32>
    %219 = math.exp %218 : vector<8x128xf32>
    %cst_61 = arith.constant 1.000000e+00 : f32
    %220 = vector.broadcast %cst_61 : f32 to vector<8x128xf32>
    %221 = arith.addf %220, %219 : vector<8x128xf32>
    %222 = arith.divf %220, %221 : vector<8x128xf32>
    %223 = arith.mulf %214, %195 : vector<8x128xf32>
    %224 = arith.mulf %208, %216 : vector<8x128xf32>
    %225 = arith.addf %223, %224 : vector<8x128xf32>
    %226 = math.tanh %225 : vector<8x128xf32>
    %227 = arith.mulf %222, %226 : vector<8x128xf32>
    %c7_i32 = arith.constant 7 : i32
    %228 = arith.index_cast %c7_i32 : i32 to index
    %c0_62 = arith.constant 0 : index
    %c0_63 = arith.constant 0 : index
    %229 = vector.load %arg12[%228, %c0_62, %c0_63] : memref<8x8x512xf32, #tpu.memory_space<vmem>>, vector<1x8x512xf32>
    %230 = vector.shape_cast %229 : vector<1x8x512xf32> to vector<8x512xf32>
    %cst_64 = arith.constant dense<0.000000e+00> : vector<8x512xf32>
    %231 = tpu.matmul %227, %15, %cst_64 {dimension_numbers = #tpu.dot_dimension_numbers<[1], [0], [0], [1], [0, 0, 1, 1], [], []>} : vector<8x128xf32>, vector<128x512xf32>, vector<8x512xf32> -> vector<8x512xf32>
    %232 = arith.addf %230, %231 : vector<8x512xf32>
    %233 = vector.extract_strided_slice %232 {offsets = [0, 0], sizes = [8, 128], strides = [1, 1]} : vector<8x512xf32> to vector<8x128xf32>
    %234 = arith.negf %233 : vector<8x128xf32>
    %235 = math.exp %234 : vector<8x128xf32>
    %cst_65 = arith.constant 1.000000e+00 : f32
    %236 = vector.broadcast %cst_65 : f32 to vector<8x128xf32>
    %237 = arith.addf %236, %235 : vector<8x128xf32>
    %238 = arith.divf %236, %237 : vector<8x128xf32>
    %239 = vector.extract_strided_slice %232 {offsets = [0, 128], sizes = [8, 128], strides = [1, 1]} : vector<8x512xf32> to vector<8x128xf32>
    %240 = arith.negf %239 : vector<8x128xf32>
    %241 = math.exp %240 : vector<8x128xf32>
    %cst_66 = arith.constant 1.000000e+00 : f32
    %242 = vector.broadcast %cst_66 : f32 to vector<8x128xf32>
    %243 = arith.addf %242, %241 : vector<8x128xf32>
    %244 = arith.divf %242, %243 : vector<8x128xf32>
    %245 = vector.extract_strided_slice %232 {offsets = [0, 256], sizes = [8, 128], strides = [1, 1]} : vector<8x512xf32> to vector<8x128xf32>
    %246 = math.tanh %245 : vector<8x128xf32>
    %247 = vector.extract_strided_slice %232 {offsets = [0, 384], sizes = [8, 128], strides = [1, 1]} : vector<8x512xf32> to vector<8x128xf32>
    %248 = arith.negf %247 : vector<8x128xf32>
    %249 = math.exp %248 : vector<8x128xf32>
    %cst_67 = arith.constant 1.000000e+00 : f32
    %250 = vector.broadcast %cst_67 : f32 to vector<8x128xf32>
    %251 = arith.addf %250, %249 : vector<8x128xf32>
    %252 = arith.divf %250, %251 : vector<8x128xf32>
    %253 = arith.mulf %244, %225 : vector<8x128xf32>
    %254 = arith.mulf %238, %246 : vector<8x128xf32>
    %255 = arith.addf %253, %254 : vector<8x128xf32>
    %256 = math.tanh %255 : vector<8x128xf32>
    %257 = arith.mulf %252, %256 : vector<8x128xf32>
    %c8_i32 = arith.constant 8 : i32
    %c0_68 = arith.constant 0 : index
    %c0_69 = arith.constant 0 : index
    %258 = vector.load %arg8[%c0_68, %c0_69] : memref<1x128xf32, #tpu.memory_space<vmem>>, vector<1x128xf32>
    %259 = vector.broadcast %258 : vector<1x128xf32> to vector<8x128xf32>
    %260 = arith.mulf %257, %259 : vector<8x128xf32>
    %cst_70 = arith.constant dense<0.000000e+00> : vector<8xf32>
    %261 = vector.multi_reduction <add>, %260, %cst_70 [1] : vector<8x128xf32> to vector<8xf32>
    %262 = vector.shape_cast %261 : vector<8xf32> to vector<8x1xf32>
    %c0_71 = arith.constant 0 : index
    %c0_72 = arith.constant 0 : index
    %263 = vector.load %arg9[%c0_71, %c0_72] : memref<1x128xf32, #tpu.memory_space<vmem>>, vector<1x128xf32>
    %264 = vector.broadcast %263 : vector<1x128xf32> to vector<8x128xf32>
    %265 = arith.mulf %14, %264 : vector<8x128xf32>
    %cst_73 = arith.constant dense<0.000000e+00> : vector<8xf32>
    %266 = vector.multi_reduction <add>, %265, %cst_73 [1] : vector<8x128xf32> to vector<8xf32>
    %267 = vector.shape_cast %266 : vector<8xf32> to vector<8x1xf32>
    %268 = arith.addf %262, %267 : vector<8x1xf32>
    %c0_74 = arith.constant 0 : index
    %c0_75 = arith.constant 0 : index
    %269 = vector.load %arg10[%c0_74, %c0_75] : memref<1x1xf32, #tpu.memory_space<vmem>>, vector<1x1xf32>
    %270 = vector.broadcast %269 : vector<1x1xf32> to vector<8x1xf32>
    %271 = arith.addf %268, %270 : vector<8x1xf32>
    %c0_76 = arith.constant 0 : index
    %c0_77 = arith.constant 0 : index
    %272 = vector.load %arg11[%c0_76, %c0_77] : memref<8x1xf32, #tpu.memory_space<vmem>>, vector<8x1xf32>
    tpu.vector_store %arg11[%c0_76, %c0_77], %271 {strides = array<i32>} : memref<8x1xf32, #tpu.memory_space<vmem>>, vector<8x1xf32>,
    return
  }
  func.func @transform_0(%arg0: i32) -> (i32, i32, i32) {
    %c0_i32 = arith.constant 0 : i32
    %c0_i32_0 = arith.constant 0 : i32
    %c0_i32_1 = arith.constant 0 : i32
    return %c0_i32, %arg0, %c0_i32_0 : i32, i32, i32
  }
  func.func @transform_1(%arg0: i32) -> (i32, i32) {
    %c0_i32 = arith.constant 0 : i32
    %c0_i32_0 = arith.constant 0 : i32
    return %arg0, %c0_i32 : i32, i32
  }
  func.func @transform_2(%arg0: i32) -> (i32, i32) {
    %c0_i32 = arith.constant 0 : i32
    %c0_i32_0 = arith.constant 0 : i32
    %c0_i32_1 = arith.constant 0 : i32
    return %c0_i32, %c0_i32_0 : i32, i32
  }
  func.func @transform_3(%arg0: i32) -> (i32, i32) {
    %c0_i32 = arith.constant 0 : i32
    %c0_i32_0 = arith.constant 0 : i32
    %c0_i32_1 = arith.constant 0 : i32
    return %c0_i32, %c0_i32_0 : i32, i32
  }
  func.func @transform_4(%arg0: i32) -> (i32, i32) {
    %c0_i32 = arith.constant 0 : i32
    %c0_i32_0 = arith.constant 0 : i32
    %c0_i32_1 = arith.constant 0 : i32
    return %c0_i32, %c0_i32_0 : i32, i32
  }
  func.func @transform_5(%arg0: i32) -> (i32, i32) {
    %c0_i32 = arith.constant 0 : i32
    %c0_i32_0 = arith.constant 0 : i32
    %c0_i32_1 = arith.constant 0 : i32
    return %c0_i32, %c0_i32_0 : i32, i32
  }
  func.func @transform_6(%arg0: i32) -> (i32, i32) {
    %c0_i32 = arith.constant 0 : i32
    %c0_i32_0 = arith.constant 0 : i32
    %c0_i32_1 = arith.constant 0 : i32
    return %c0_i32, %c0_i32_0 : i32, i32
  }
  func.func @transform_7(%arg0: i32) -> (i32, i32) {
    %c0_i32 = arith.constant 0 : i32
    %c0_i32_0 = arith.constant 0 : i32
    %c0_i32_1 = arith.constant 0 : i32
    return %c0_i32, %c0_i32_0 : i32, i32
  }
  func.func @transform_8(%arg0: i32) -> (i32, i32) {
    %c0_i32 = arith.constant 0 : i32
    %c0_i32_0 = arith.constant 0 : i32
    %c0_i32_1 = arith.constant 0 : i32
    return %c0_i32, %c0_i32_0 : i32, i32
  }
  func.func @transform_9(%arg0: i32) -> (i32, i32) {
    %c0_i32 = arith.constant 0 : i32
    %c0_i32_0 = arith.constant 0 : i32
    %c0_i32_1 = arith.constant 0 : i32
    return %c0_i32, %c0_i32_0 : i32, i32
  }
  func.func @transform_10(%arg0: i32) -> (i32, i32) {
    %c0_i32 = arith.constant 0 : i32
    %c0_i32_0 = arith.constant 0 : i32
    return %arg0, %c0_i32 : i32, i32
  }
}

</mosaic_0001>

<bundles_post_ra>
// kernel: tpu_custom_call.1
= control target key start
LH: loop header
LB: loop body
LE: loop exit
PB: predicated region body
PF: predicated region fallthrough
CT: control target
= control target key end

     0   :  { %s3526_s0 = inlined_call_operand.hbm [shape: f32[8,8,16], index: 0, kind: input, shape index: {}]   ;;  %s3527_s1 = inlined_call_operand.hbm [shape: f32[8,12], index: 1, kind: input, shape index: {}]   ;;  %s3528_s2 = inlined_call_operand.hbm [shape: f32[16,512], index: 2, kind: input, shape index: {}]   ;;  %s3529_s3 = inlined_call_operand.hbm [shape: f32[128,512], index: 3, kind: input, shape index: {}]   ;;  %s3530_s4 = inlined_call_operand.vmem [shape: f32[1,512], index: 4, kind: input, shape index: {}]   ;;  %s3531_s5 = inlined_call_operand.vmem [shape: f32[12,128], index: 5, kind: input, shape index: {}]   ;;  %s3532_s6 = inlined_call_operand.vmem [shape: f32[1,128], index: 6, kind: input, shape index: {}]   ;;  %s3533_s7 = inlined_call_operand.vmem [shape: f32[1,128], index: 7, kind: input, shape index: {}]   ;;  %s3534_s8 = inlined_call_operand.vmem [shape: f32[1,128], index: 8, kind: input, shape index: {}]   ;;  %s3535_s9 = inlined_call_operand.<no memory space> [shape: f32[1,1], index: 9, kind: input, shape index: {}]   ;;  %s3536_s10 = inlined_call_operand.vmem [shape: f32[8,1], index: 10, kind: output, shape index: {}]  }
   0x1   :  { %v15_v0 = vstv %s3535_s9 }
   0x2   :  { %16 = vst [vmem:[#allocation3] sm:$0x1] %v15_v0 }
   0x3   :  { %17 = vsyncpa [#allocation5], 0 }
   0x4   :  { %18 = vsyncpa [#allocation7], 0 }
   0x5   :  { %19 = vsyncpa [#allocation10], 0  ;;  %s2880_s15 = smov [#allocation6]   ;;  %s2881_s17 = smov [#allocation4]  }
   0x6   :  { %s38_s16 = sshll.u32 %s2880_s15, 4  ;;  %s25_s18 = sshll.u32 %s2881_s17, 4  ;;  %s39_s16 = int_to_ptr.vmem [resolvable:$true] %s38_s16  ;;  %s2950_s18 = int_to_ptr.vmem [resolvable:$true] %s25_s18 }
   0x7   :  { %s2786_s21 = scalar_lea.hbm %s3527_s1, 128 }
   0x8   :  { %p2787_p0 = scmp.ne.s32.totalorder %s3527_s1, %s2786_s21  ;;  %p2790_p1 = scmp.lt.u32.totalorder %s2786_s21, %s3527_s1 }
   0xa   :  { %p2792_p2 = pnand %p2790_p1, %p2787_p0 }
   0xc   :  { %2795 = shalt.err (!%p2792_p2)
}
   0xd   :  { %s2796_s25 = scalar_lea.vmem %s39_s16, 128  ;;  %p2801_p4 = scmp.lt.s32.totalorder %s39_s16, %s39_s16 }
   0xe   :  { %p2797_p3 = scmp.ne.s32.totalorder %s39_s16, %s2796_s25  ;;  %p2802_p5 = scmp.lt.s32.totalorder %s2796_s25, %s2796_s25 }
  0x10   :  { %p2803_p6 = por %p2802_p5, %p2801_p4 }
  0x12   :  { %p2804_p7 = pnand %p2803_p6, %p2797_p3 }
  0x14   :  { %2807 = shalt.err (!%p2804_p7)
}
  0x15   :  { %41 = dma.hbm_to_vmem [thread:$0]  %s3527_s1, 128, %s39_s16, [#allocation7]  }
  0x16   :  { %s2808_s30 = scalar_lea.hbm %s3526_s0, 1024 }
  0x17   :  { %p2809_p8 = scmp.ne.s32.totalorder %s3526_s0, %s2808_s30  ;;  %p2812_p9 = scmp.lt.u32.totalorder %s2808_s30, %s3526_s0 }
  0x19   :  { %p2814_p10 = pnand %p2812_p9, %p2809_p8 }
  0x1b   :  { %2817 = shalt.err (!%p2814_p10)
}
  0x1c   :  { %s2818_s15 = scalar_lea.vmem %s2950_s18, 1024  ;;  %p2823_p12 = scmp.lt.s32.totalorder %s2950_s18, %s2950_s18 }
  0x1d   :  { %p2819_p11 = scmp.ne.s32.totalorder %s2950_s18, %s2818_s15  ;;  %p2824_p13 = scmp.lt.s32.totalorder %s2818_s15, %s2818_s15 }
  0x1f   :  { %p2825_p0 = por %p2824_p13, %p2823_p12 }
  0x21   :  { %p2826_p1 = pnand %p2825_p0, %p2819_p11 }
  0x23   :  { %2829 = shalt.err (!%p2826_p1)
}
  0x24   :  { %s2882_s1 = smov 128   ;;  %s2883_s16 = smov 8  }
  0x25   :  { %31 = dma.hbm_to_vmem [thread:$0]  %s3526_s0, 1024, %s2950_s18, [#allocation5], %s2882_s1, %s2882_s1, %s2883_s16  }
  0x26   :  { %s2884_s20 = smov [#allocation8]   ;;  %s2830_s9 = scalar_lea.hbm %s3528_s2, 1024 }
  0x27   :  { %s47_s21 = sshll.u32 %s2884_s20, 4  ;;  %p2831_p2 = scmp.ne.s32.totalorder %s3528_s2, %s2830_s9  ;;  %s48_s21 = int_to_ptr.vmem [resolvable:$true] %s47_s21 }
  0x28   :  { %p2834_p3 = scmp.lt.u32.totalorder %s2830_s9, %s3528_s2 }
  0x2a   :  { %p2836_p4 = pnand %p2834_p3, %p2831_p2 }
  0x2c   :  { %2839 = shalt.err (!%p2836_p4)
}
  0x2d   :  { %s2840_s28 = scalar_lea.vmem %s48_s21, 1024  ;;  %p2845_p6 = scmp.lt.s32.totalorder %s48_s21, %s48_s21 }
  0x2e   :  { %p2841_p5 = scmp.ne.s32.totalorder %s48_s21, %s2840_s28  ;;  %p2846_p7 = scmp.lt.s32.totalorder %s2840_s28, %s2840_s28 }
  0x30   :  { %p2847_p8 = por %p2846_p7, %p2845_p6 }
  0x32   :  { %p2848_p9 = pnand %p2847_p8, %p2841_p5 }
  0x34   :  { %2851 = shalt.err (!%p2848_p9)
}
  0x35   :  { %s2885_s0 = smov 512   ;;  %s2886_s18 = smov 32  }
  0x36   :  { %53 = dma.hbm_to_vmem [thread:$0]  %s3528_s2, 1024, %s48_s21, [#allocation7], %s2885_s0, %s2885_s0, %s2886_s18  }
  0x37   :  { %s2887_s11 = smov [#allocation9]   ;;  %s2852_s15 = scalar_lea.hbm %s3529_s3, 8192 }
  0x38   :  { %s59_s12 = sshll.u32 %s2887_s11, 4  ;;  %p2853_p10 = scmp.ne.s32.totalorder %s3529_s3, %s2852_s15  ;;  %s60_s12 = int_to_ptr.vmem [resolvable:$true] %s59_s12 }
  0x39   :  { %p2856_p11 = scmp.lt.u32.totalorder %s2852_s15, %s3529_s3 }
  0x3b   :  { %p2858_p12 = pnand %p2856_p11, %p2853_p10 }
  0x3d   :  { %2861 = shalt.err (!%p2858_p12)
}
  0x3e   :  { %s2862_s20 = scalar_lea.vmem %s60_s12, 8192  ;;  %p2867_p0 = scmp.lt.s32.totalorder %s60_s12, %s60_s12 }
  0x3f   :  { %p2863_p13 = scmp.ne.s32.totalorder %s60_s12, %s2862_s20  ;;  %p2868_p1 = scmp.lt.s32.totalorder %s2862_s20, %s2862_s20 }
  0x41   :  { %p2869_p2 = por %p2868_p1, %p2867_p0 }
  0x43   :  { %p2870_p3 = pnand %p2869_p2, %p2863_p13 }
  0x45   :  { %2873 = shalt.err (!%p2870_p3)
}
  0x46   :  { %65 = dma.hbm_to_vmem [thread:$0]  %s3529_s3, 8192, %s60_s12, [#allocation10], %s2885_s0, %s2885_s0, %s2886_s18  }
  0x47   :  { %2874 = dma.done.wait [#allocation5], 1024  }
  0x48   :  { %2875 = vsyncadd [#allocation5], 4294966272 }
  0x49   :  { %2876 = dma.done.wait [#allocation7], 1152  }
  0x4a   :  { %2877 = vsyncadd [#allocation7], 4294966144 }
  0x4b   :  { %2878 = dma.done.wait [#allocation10], 8192  }
  0x4c   :  { %2879 = vsyncadd [#allocation10], 4294959104  ;;  %v2888_v1 = vmov 0.0   ;;  %v99_v2 = vld [vmem:[#allocation8 + $0x8] sm:$0xff]  ;;  %v98_v4 = vld [vmem:[#allocation8] sm:$0xff]  ;;  %vm425_vm0 = vcmask 1043456  }
  0x4d   :  { %217 = vmatprep.mubr.f32.mxu0 %v2888_v1  ;;  %241 = vmatprep.mubr.f32.mxu1 %v2888_v1  ;;  %v103_v3 = vld [vmem:[#allocation8 + $0x28] sm:$0xff]  ;;  %v102_v6 = vld [vmem:[#allocation8 + $0x20] sm:$0xff]  ;;  %v412_v8 = vld [vmem:[%s3531_s5] sm:$0xff]  ;;  %vm2889_vm1 = vmmov 1   ;;  %vm128_vm3 = vcmask 130048   ;;  %v2890_v15 = vmov 0.0|0.0  }
  0x4e   :  { %v2056_v5 = vpack.c.bf16 %v103_v3, %v99_v2  ;;  %v2058_v7 = vpack.c.bf16 %v102_v6, %v98_v4  ;;  %v413_v9 = vld [vmem:[%s3531_s5 + $0x8] sm:$0xf]  ;;  %vm3013_vm2 = vmpackc.low %vm425_vm0, %vm2889_vm1  ;;  %v100_v17 = vld [vmem:[#allocation8 + $0x10] sm:$0xff]  ;;  %vm2891_vm4 = vmmov 0   ;;  %vm421_vm5 = vcmask 97280  }
  0x4f   :  { %v3017_v11 = vld [vmem:[#allocation4] sm:$0xff]  ;;  %v2065_v13 = vpack.c.bf16 %v413_v9, %v412_v8  ;;  %v104_v18 = vld [vmem:[#allocation8 + $0x30] sm:$0xff]  ;;  %v500_v21 = vld [vmem:[#allocation9 + $0x8] sm:$0xff]  ;;  %vm1991_vm6 = vcmask 7168  }
  0x50   :  { %2057 = vmatprep.subr.bf16.mxu0 %v2056_v5  ;;  %2580 = vmatprep.subr.bf16.mxu1 %v2056_v5  ;;  %v3019_v12 = vld [vmem:[#allocation4 + $0x20] sm:$0xff]  ;;  %v2062_v20 = vpack.c.bf16 %v104_v18, %v100_v17  ;;  %v504_v22 = vld [vmem:[#allocation9 + $0x28] sm:$0xff]  ;;  %v3030_v25 = vld [vmem:[#allocation4 + $0x8] sm:$0xff] }
  0x51   :  { %2059 = vmatpush1.bf16.msra.mxu0 %v2058_v7  ;;  %2581 = vmatpush1.bf16.msra.mxu1 %v2058_v7  ;;  %v101_v14 = vld [vmem:[#allocation8 + $0x18] sm:$0xff]  ;;  %v3025_v23 = vpack.c.bf16 %v504_v22, %v500_v21  ;;  %v3032_v26 = vld [vmem:[#allocation4 + $0x28] sm:$0xff]  ;;  %v3044_v29 = vld [vmem:[#allocation4 + $0x10] sm:$0xff] }
  0x52   :  { %2064 = vmatprep.subr.bf16.mxu0 %v2890_v15  ;;  %v105_v16 = vld [vmem:[#allocation8 + $0x38] sm:$0xff]  ;;  %v3046_v30 = vld [vmem:[#allocation4 + $0x30] sm:$0xff]  ;;  %v3055_v31 = vld [vmem:[#allocation4 + $0x18] sm:$0xff] }
  0x53   :  { %v2060_v19 = vpack.c.bf16 %v105_v16, %v101_v14  ;;  %v502_v24 = vld [vmem:[#allocation9 + $0x18] sm:$0xff]  ;;  %v3057_v32 = vld [vmem:[#allocation4 + $0x38] sm:$0xff]  ;;  %v499_v33 = vld [vmem:[#allocation9] sm:$0xff] }
  0x54   :  { %2000 = vmatmul.mubr.msk.f32.vlgmr.msra.gmra.mrb[0].mxu0 %vm128_vm3, %v3017_v11  ;;  %2004 = vmatmul.mubr.msk.f32.vlgmr.msra.gmra.mrb[0].mxu1 %vm128_vm3, %v3019_v12  ;;  %v506_v27 = vld [vmem:[#allocation9 + $0x38] sm:$0xff]  ;;  %v503_v34 = vld [vmem:[#allocation9 + $0x20] sm:$0xff]  ;;  %v501_v35 = vld [vmem:[#allocation9 + $0x10] sm:$0xff] }
  0x55   :  { %2067 = vmatpush3.bf16.msk.msra.mxu0 %vm3013_vm2, %v2065_v13  ;;  %223 = vmatprep.mubr.f32.mxu0 %v2888_v1  ;;  %v3035_v28 = vpack.c.bf16 %v506_v27, %v502_v24  ;;  %v505_v36 = vld [vmem:[#allocation9 + $0x30] sm:$0xff]  ;;  %v508_v37 = vld [vmem:[#allocation9 + $0x48] sm:$0xff]  ;;  %v510_v39 = vld [vmem:[#allocation9 + $0x58] sm:$0xff]  ;;  %v3065_v42 = vpack.c.bf16 %v503_v34, %v499_v33 }
  0x56   :  { %247 = vmatprep.mubr.f32.mxu1 %v2888_v1  ;;  %2061 = vmatprep.subr.bf16.mxu1 %v2060_v19  ;;  %v512_v38 = vld [vmem:[#allocation9 + $0x68] sm:$0xff]  ;;  %v514_v40 = vld [vmem:[#allocation9 + $0x78] sm:$0xff]  ;;  %v3067_v43 = vpack.c.bf16 %v505_v36, %v501_v35  ;;  %v507_v44 = vld [vmem:[#allocation9 + $0x40] sm:$0xff] }
  0x57   :  { %2063 = vmatpush1.bf16.msra.mxu1 %v2062_v20  ;;  %2069 = vmatprep.subr.bf16.mxu0 %v3025_v23  ;;  %v411_v41 = vld [vmem:[#allocation6] sm:$0xff]  ;;  %v3069_v45 = vpack.c.bf16 %v512_v38, %v508_v37  ;;  %v511_v46 = vld [vmem:[#allocation9 + $0x60] sm:$0xff]  ;;  %v509_v47 = vld [vmem:[#allocation9 + $0x50] sm:$0xff]  ;;  %v3071_v49 = vpack.c.bf16 %v514_v40, %v510_v39 }
  0x58   :  { %2001 = vmatmul.mubr.msk.f32.gmra.mrb[2].mxu0 %vm128_vm3, %v3030_v25  ;;  %2005 = vmatmul.mubr.msk.f32.gmra.mrb[2].mxu1 %vm128_vm3, %v3032_v26  ;;  %v513_v48 = vld [vmem:[#allocation9 + $0x70] sm:$0xff]  ;;  %v516_v50 = vld [vmem:[#allocation9 + $0x88] sm:$0xff]  ;;  %v518_v52 = vld [vmem:[#allocation9 + $0x98] sm:$0xff]  ;;  %v3077_v54 = vpack.c.bf16 %v511_v46, %v507_v44 }
  0x59   :  { %229 = vmatprep.mubr.f32.mxu0 %v2888_v1  ;;  %253 = vmatprep.mubr.f32.mxu1 %v2888_v1  ;;  %v520_v51 = vld [vmem:[#allocation9 + $0xa8] sm:$0xff]  ;;  %v522_v53 = vld [vmem:[#allocation9 + $0xb8] sm:$0xff]  ;;  %v3079_v55 = vpack.c.bf16 %v513_v48, %v509_v47  ;;  %v515_v56 = vld [vmem:[#allocation9 + $0x80] sm:$0xff] }
  0x5a   :  { %2101 = vmatprep.subr.bf16.mxu1 %v3035_v28  ;;  %v3083_v57 = vpack.c.bf16 %v520_v51, %v516_v50  ;;  %v519_v58 = vld [vmem:[#allocation9 + $0xa0] sm:$0xff]  ;;  %v517_v59 = vld [vmem:[#allocation9 + $0x90] sm:$0xff]  ;;  %v3086_v61 = vpack.c.bf16 %v522_v53, %v518_v52  ;;  %v524_v62 = vld [vmem:[#allocation9 + $0xc8] sm:$0xff] }
  0x5b   :  { %v521_v60 = vld [vmem:[#allocation9 + $0xb0] sm:$0xff]  ;;  %v528_v63 = vld [vmem:[#allocation9 + $0xe8] sm:$0xff]  ;;  %v526_v0 = vld [vmem:[#allocation9 + $0xd8] sm:$0xff]  ;;  %v3093_v3 = vpack.c.bf16 %v519_v58, %v515_v56 }
  0x5c   :  { %2002 = vmatmul.mubr.msk.f32.gmra.mrb[4].mxu0 %vm128_vm3, %v3044_v29  ;;  %2006 = vmatmul.mubr.msk.f32.gmra.mrb[4].mxu1 %vm128_vm3, %v3046_v30  ;;  %v530_v2 = vld [vmem:[#allocation9 + $0xf8] sm:$0xff]  ;;  %v3095_v4 = vpack.c.bf16 %v521_v60, %v517_v59  ;;  %v523_v5 = vld [vmem:[#allocation9 + $0xc0] sm:$0xff]  ;;  %v3099_v6 = vpack.c.bf16 %v528_v63, %v524_v62  ;;  %v525_v8 = vld [vmem:[#allocation9 + $0xd0] sm:$0xff] }
  0x5d   :  { %235 = vmatprep.mubr.f32.mxu0 %v2888_v1  ;;  %259 = vmatprep.mubr.f32.mxu1 %v2888_v1  ;;  %v527_v7 = vld [vmem:[#allocation9 + $0xe0] sm:$0xff]  ;;  %v529_v9 = vld [vmem:[#allocation9 + $0xf0] sm:$0xff]  ;;  %v3102_v10 = vpack.c.bf16 %v530_v2, %v526_v0  ;;  %v536_v13 = vld [vmem:[#allocation9 + $0x128] sm:$0xff] }
  0x5e   :  { %v534_v14 = vld [vmem:[#allocation9 + $0x118] sm:$0xff]  ;;  %v3108_v16 = vpack.c.bf16 %v527_v7, %v523_v5  ;;  %v3110_v17 = vpack.c.bf16 %v529_v9, %v525_v8  ;;  %v531_v18 = vld [vmem:[#allocation9 + $0x100] sm:$0xff]  ;;  %v533_v21 = vld [vmem:[#allocation9 + $0x110] sm:$0xff] }
  0x5f   :  { %v538_v15 = vld [vmem:[#allocation9 + $0x138] sm:$0xff]  ;;  %v535_v20 = vld [vmem:[#allocation9 + $0x120] sm:$0xff]  ;;  %v537_v22 = vld [vmem:[#allocation9 + $0x130] sm:$0xff] }
  0x60   :  { %2003 = vmatmul.mubr.msk.f32.gmra.mrb[6].mxu0 %vm128_vm3, %v3055_v31  ;;  %2007 = vmatmul.mubr.msk.f32.gmra.mrb[6].mxu1 %vm128_vm3, %v3057_v32  ;;  %v3117_v24 = vpack.c.bf16 %v538_v15, %v534_v14  ;;  %v544_v27 = vld [vmem:[#allocation9 + $0x168] sm:$0xff]  ;;  %v546_v33 = vld [vmem:[#allocation9 + $0x178] sm:$0xff]  ;;  %v3123_v34 = vpack.c.bf16 %v535_v20, %v531_v18  ;;  %v3125_v35 = vpack.c.bf16 %v537_v22, %v533_v21  ;;  %v539_v36 = vld [vmem:[#allocation9 + $0x140] sm:$0xff] }
  0x61   :  { %330 = vmatprep.mubr.f32.mxu1 %v2888_v1  ;;  %2053 = vmatprep.mubr.msk.f32.mxu0 %vm2891_vm4, %v2888_v1  ;;  %v543_v38 = vld [vmem:[#allocation9 + $0x160] sm:$0xff]  ;;  %v541_v39 = vld [vmem:[#allocation9 + $0x150] sm:$0xff]  ;;  %v552_v44 = vld [vmem:[#allocation9 + $0x1a8] sm:$0xff] }
  0x62   :  { %v550_v46 = vld [vmem:[#allocation9 + $0x198] sm:$0xff]  ;;  %v3138_v48 = vpack.c.bf16 %v543_v38, %v539_v36  ;;  %v547_v51 = vld [vmem:[#allocation9 + $0x180] sm:$0xff]  ;;  %v549_v56 = vld [vmem:[#allocation9 + $0x190] sm:$0xff] }
  0x63   :  { %v554_v47 = vld [vmem:[#allocation9 + $0x1b8] sm:$0xff]  ;;  %v551_v53 = vld [vmem:[#allocation9 + $0x1a0] sm:$0xff]  ;;  %v556_v59 = vld [vmem:[#allocation9 + $0x1c8] sm:$0xff] }
  0x64   :  { %2008 = vmatmul.mubr.msk.f32.vlgmr.msra.gmra.mrb[8].mxu1 %vm128_vm3, %v3017_v11  ;;  %2054 = vmatmul.mubr.msk.f32.vlgmr.msra.gmra.mrb[8].mxu0 %vm421_vm5, %v411_v41  ;;  %v532_v11 = vld [vmem:[#allocation9 + $0x108] sm:$0xff]  ;;  %v3147_v58 = vpack.c.bf16 %v554_v47, %v550_v46  ;;  %v558_v62 = vld [vmem:[#allocation9 + $0x1d8] sm:$0xff]  ;;  %v3153_v0 = vpack.c.bf16 %v551_v53, %v547_v51  ;;  %v555_v5 = vld [vmem:[#allocation9 + $0x1c0] sm:$0xff] }
  0x65   :  { %2071 = vmatpush1.bf16.msra.mxu0 %v3065_v42  ;;  %2103 = vmatpush1.bf16.msra.mxu1 %v3067_v43  ;;  %v3114_v19 = vpack.c.bf16 %v536_v13, %v532_v11  ;;  %v548_v41 = vld [vmem:[#allocation9 + $0x188] sm:$0xff]  ;;  %v562_v63 = vld [vmem:[#allocation9 + $0x1f8] sm:$0xff]  ;;  %v559_v8 = vld [vmem:[#allocation9 + $0x1e0] sm:$0xff] }
  0x66   :  { %336 = vmatprep.mubr.f32.mxu1 %v2888_v1  ;;  %2073 = vmatprep.subr.bf16.mxu0 %v3069_v45  ;;  %v3144_v52 = vpack.c.bf16 %v552_v44, %v548_v41  ;;  %v560_v60 = vld [vmem:[#allocation9 + $0x1e8] sm:$0xff]  ;;  %v557_v9 = vld [vmem:[#allocation9 + $0x1d0] sm:$0xff]  ;;  %v3162_v11 = vpack.c.bf16 %v562_v63, %v558_v62  ;;  %v3168_v13 = vpack.c.bf16 %v559_v8, %v555_v5 }
  0x67   :  { %2105 = vmatprep.subr.bf16.mxu1 %v3071_v49  ;;  %631 = vmatprep.mubr.f32.mxu0 %v2888_v1  ;;  %v3159_v7 = vpack.c.bf16 %v560_v60, %v556_v59 }
  0x68   :  { %2009 = vmatmul.mubr.msk.f32.gmra.mrb[10].mxu1 %vm128_vm3, %v3030_v25  ;;  %v540_v25 = vld [vmem:[#allocation9 + $0x148] sm:$0xff] }
  0x69   :  { %2075 = vmatpush1.bf16.msra.mxu0 %v3077_v54  ;;  %2107 = vmatpush1.bf16.msra.mxu1 %v3079_v55  ;;  %v3129_v37 = vpack.c.bf16 %v544_v27, %v540_v25 }
  0x6a   :  { %342 = vmatprep.mubr.f32.mxu1 %v2888_v1  ;;  %2077 = vmatprep.subr.bf16.mxu0 %v3083_v57 }
  0x6b   :  { %2109 = vmatprep.subr.bf16.mxu1 %v3086_v61 }
  0x6c   :  { %2010 = vmatmul.mubr.msk.f32.gmra.mrb[12].mxu1 %vm128_vm3, %v3044_v29  ;;  %v542_v29 = vld [vmem:[#allocation9 + $0x158] sm:$0xff] }
  0x6d   :  { %2079 = vmatpush1.bf16.msra.mxu0 %v3093_v3  ;;  %2111 = vmatpush1.bf16.msra.mxu1 %v3095_v4  ;;  %v3132_v40 = vpack.c.bf16 %v546_v33, %v542_v29  ;;  %v108_v33 = vlaneseq }
  0x6e   :  { %348 = vmatprep.mubr.f32.mxu1 %v2888_v1  ;;  %2081 = vmatprep.subr.bf16.mxu0 %v3099_v6 }
  0x6f   :  { %2113 = vmatprep.subr.bf16.mxu1 %v3102_v10  ;;  %v109_v36 = vshrl.u32 %v108_v33, 7 }
  0x70   :  { %2011 = vmatmul.mubr.msk.f32.gmra.mrb[14].mxu1 %vm128_vm3, %v3055_v31  ;;  %v545_v31 = vld [vmem:[#allocation9 + $0x170] sm:$0xff] }
  0x71   :  { %2083 = vmatpush1.bf16.msra.mxu0 %v3108_v16  ;;  %2115 = vmatpush1.bf16.msra.mxu1 %v3110_v17  ;;  %v3140_v50 = vpack.c.bf16 %v545_v31, %v541_v39  ;;  %v110_v38 = vsub.s32 0, %v109_v36  ;;  %v106_v39 = vld [vmem:[%s3530_s4] sm:$0xf]  ;;  %v114_v31 = vsub.s32 1, %v109_v36  ;;  %v122_v51 = vsub.s32 3, %v109_v36 }
  0x72   :  { %354 = vmatprep.mubr.f32.mxu1 %v2888_v1  ;;  %2085 = vmatprep.subr.bf16.mxu0 %v3114_v19  ;;  %v118_v5 = vsub.s32 2, %v109_v36 }
  0x73   :  { %2117 = vmatprep.subr.bf16.mxu1 %v3117_v24  ;;  %v3239_v41 = vrot.slane %v106_v39, %v110_v38  ;;  %v3241_v44 = vrot.slane %v106_v39, %v114_v31  ;;  %v3245_v63 = vrot.slane %v106_v39, %v122_v51 }
  0x74   :  { %2012 = vmatmul.mubr.msk.f32.gmra.mrb[16].mxu1 %vm128_vm3, %v3019_v12  ;;  %v553_v12 = vld [vmem:[#allocation9 + $0x1b0] sm:$0xff] }
  0x75   :  { %2087 = vmatpush1.bf16.msra.mxu0 %v3123_v34  ;;  %2119 = vmatpush1.bf16.msra.mxu1 %v3125_v35  ;;  %v3155_v2 = vpack.c.bf16 %v553_v12, %v549_v56 }
  0x76   :  { %360 = vmatprep.mubr.f32.mxu1 %v2888_v1  ;;  %2089 = vmatprep.subr.bf16.mxu0 %v3129_v37 }
  0x77   :  { %2121 = vmatprep.subr.bf16.mxu1 %v3132_v40 }
  0x78   :  { %2013 = vmatmul.mubr.msk.f32.gmra.mrb[18].mxu1 %vm128_vm3, %v3032_v26  ;;  %v561_v26 = vld [vmem:[#allocation9 + $0x1f0] sm:$0xff] }
  0x79   :  { %2091 = vmatpush1.bf16.msra.mxu0 %v3138_v48  ;;  %2123 = vmatpush1.bf16.msra.mxu1 %v3140_v50  ;;  %v3170_v14 = vpack.c.bf16 %v561_v26, %v557_v9  ;;  %v3248_v9 = vrot.slane %v106_v39, %v118_v5 }
  0x7a   :  { %366 = vmatprep.mubr.f32.mxu1 %v2888_v1  ;;  %2093 = vmatprep.subr.bf16.mxu0 %v3144_v52 }
  0x7b   :  { %2125 = vmatprep.subr.bf16.mxu1 %v3147_v58 }
  0x7c   :  { %2014 = vmatmul.mubr.msk.f32.gmra.mrb[20].mxu1 %vm128_vm3, %v3046_v30 }
  0x7d   :  { %2095 = vmatpush1.bf16.msra.mxu0 %v3153_v0  ;;  %2127 = vmatpush1.bf16.msra.mxu1 %v3155_v2 }
  0x7e   :  { %372 = vmatprep.mubr.f32.mxu1 %v2888_v1  ;;  %2097 = vmatprep.subr.bf16.mxu0 %v3159_v7 }
  0x7f   :  { %2129 = vmatprep.subr.bf16.mxu1 %v3162_v11 }
  0x80   :  { %2015 = vmatmul.mubr.msk.f32.gmra.mrb[22].mxu1 %vm128_vm3, %v3057_v32 }
  0x81   :  { %2099 = vmatpush1.bf16.msra.mxu0 %v3168_v13  ;;  %2131 = vmatpush1.bf16.msra.mxu1 %v3170_v14 }
  0x82   :  { %702 = vmatprep.mubr.f32.mxu1 %v2888_v1  ;;  %2133 = vmatprep.subr.bf16.mxu0 %v3025_v23 }
  0x83   :  { %2165 = vmatprep.subr.bf16.mxu1 %v3035_v28 }
  0x84   :  { %632 = vmatmul.mubr.f32.vlgmr.msra.gmra.mrb[0].mxu0 %v2888_v1  ;;  %703 = vmatmul.mubr.f32.vlgmr.msra.gmra.mrb[8].mxu1 %v2888_v1 }
  0x85   :  { %2135 = vmatpush1.bf16.msra.mxu0 %v3065_v42  ;;  %2167 = vmatpush1.bf16.msra.mxu1 %v3067_v43 }
  0x86   :  { %2137 = vmatprep.subr.bf16.mxu0 %v3069_v45  ;;  %2169 = vmatprep.subr.bf16.mxu1 %v3071_v49 }
  0x87   :  { %806 = vmatprep.mubr.f32.mxu0 %v2888_v1  ;;  %877 = vmatprep.mubr.f32.mxu1 %v2888_v1 }
  0x89   :  { %2139 = vmatpush1.bf16.msra.mxu0 %v3077_v54  ;;  %2171 = vmatpush1.bf16.msra.mxu1 %v3079_v55 }
  0x8a   :  { %2141 = vmatprep.subr.bf16.mxu0 %v3083_v57  ;;  %2173 = vmatprep.subr.bf16.mxu1 %v3086_v61 }
  0x8d   :  { %2143 = vmatpush1.bf16.msra.mxu0 %v3093_v3  ;;  %2175 = vmatpush1.bf16.msra.mxu1 %v3095_v4 }
  0x8e   :  { %2145 = vmatprep.subr.bf16.mxu0 %v3099_v6  ;;  %2177 = vmatprep.subr.bf16.mxu1 %v3102_v10 }
  0x91   :  { %2147 = vmatpush1.bf16.msra.mxu0 %v3108_v16  ;;  %2179 = vmatpush1.bf16.msra.mxu1 %v3110_v17 }
  0x92   :  { %2149 = vmatprep.subr.bf16.mxu0 %v3114_v19  ;;  %2181 = vmatprep.subr.bf16.mxu1 %v3117_v24 }
  0x95   :  { %2151 = vmatpush1.bf16.msra.mxu0 %v3123_v34  ;;  %2183 = vmatpush1.bf16.msra.mxu1 %v3125_v35 }
  0x96   :  { %2153 = vmatprep.subr.bf16.mxu0 %v3129_v37  ;;  %2185 = vmatprep.subr.bf16.mxu1 %v3132_v40 }
  0x99   :  { %2155 = vmatpush1.bf16.msra.mxu0 %v3138_v48  ;;  %2187 = vmatpush1.bf16.msra.mxu1 %v3140_v50 }
  0x9a   :  { %2157 = vmatprep.subr.bf16.mxu0 %v3144_v52  ;;  %2189 = vmatprep.subr.bf16.mxu1 %v3147_v58 }
  0x9d   :  { %2159 = vmatpush1.bf16.msra.mxu0 %v3153_v0  ;;  %2191 = vmatpush1.bf16.msra.mxu1 %v3155_v2 }
  0x9e   :  { %2161 = vmatprep.subr.bf16.mxu0 %v3159_v7  ;;  %2193 = vmatprep.subr.bf16.mxu1 %v3162_v11 }
  0xa1   :  { %2163 = vmatpush1.bf16.msra.mxu0 %v3168_v13  ;;  %2195 = vmatpush1.bf16.msra.mxu1 %v3170_v14 }
  0xa2   :  { %2197 = vmatprep.subr.bf16.mxu0 %v3025_v23  ;;  %2229 = vmatprep.subr.bf16.mxu1 %v3035_v28 }
 0x127   :  { %v3218_v30 = vpop.f32.mrb[0].mxu1 }
 0x128   :  { %v3220_v32 = vpop.f32.mrb[1].mxu1 }
 0x12b   :  { %v3222_v15 = vpop.f32.mrb[2].mxu1 }
 0x12c   :  { %v3224_v18 = vpop.f32.mrb[3].mxu1 }
 0x12f   :  { %v3226_v20 = vpop.f32.mrb[4].mxu1 }
 0x130   :  { %v3228_v21 = vpop.f32.mrb[5].mxu1 }
 0x133   :  { %v3230_v22 = vpop.f32.mrb[6].mxu1 }
 0x134   :  { %v3232_v25 = vpop.f32.mrb[7].mxu1 }
 0x137   :  { %v3234_v27 = vpop.f32.mrb[8].mxu0 }
 0x138   :  { %v2055_v29 = vpop.f32.mrb[9].mxu0 }
 0x157   :  { %v633_v46 = vpop.f32.mrb[0].mxu0  ;;  %v704_v47 = vpop.f32.mrb[8].mxu1 }
 0x158   :  { %v2582_v53 = vadd.f32 %v633_v46, %v3239_v41  ;;  %v635_v56 = vpop.f32.mrb[1].mxu0  ;;  %v706_v12 = vpop.f32.mrb[9].mxu1  ;;  %v2606_v29 = vadd.f32 %v704_v47, %v3248_v9 }
 0x159   :  { %v2583_v59 = vadd.f32 %v635_v56, %v3241_v44  ;;  %v2607_v8 = vadd.f32 %v706_v12, %v3245_v63 }
 0x15a   :  { %v2019_v60 = vmul.f32 -1.442695, %v2582_v53 }
 0x15b   :  { %v2020_v62 = vmul.f32 -1.442695, %v2583_v59  ;;  %v2021_v26 = vmul.f32 -1.442695, %v2607_v8 }
 0x15c   :  { %2658 = vpow2.f32 %v2019_v60 }
 0x15d   :  { %2660 = vpow2.f32 %v2020_v62 }
 0x15e   :  { %2662 = vpow2.f32 %v2021_v26 }
 0x15f   :  { %2664 = vtanh.f32 %v2606_v29 }
 0x166   :  { %v2659_v33 = vpop.eup %2658 }
 0x167   :  { %v2661_v38 = vpop.eup %2660  ;;  %v716_v31 = vadd.f32 1.0, %v2659_v33 }
 0x168   :  { %v722_v46 = vadd.f32 1.0, %v2661_v38  ;;  %v2663_v51 = vpop.eup %2662 }
 0x169   :  { %2666 = vrcp.f32 %v716_v31  ;;  %v2665_v53 = vpop.eup %2664  ;;  %v729_v60 = vadd.f32 1.0, %v2663_v51 }
 0x16a   :  { %2668 = vrcp.f32 %v722_v46 }
 0x16b   :  { %2670 = vrcp.f32 %v729_v60 }
 0x173   :  { %v2667_v56 = vpop.eup %2666 }
 0x174   :  { %v2669_v36 = vpop.eup %2668  ;;  %v733_v59 = vmul.f32 %v2667_v56, %v2665_v53 }
 0x175   :  { %v732_v12 = vmul.f32 0.0, %v2669_v36  ;;  %v2671_v47 = vpop.eup %2670 }
 0x177   :  { %v3251_v39 = vadd.f32 %v733_v59, %v732_v12 }
 0x179   :  { %2672 = vtanh.f32 %v3251_v39 }
 0x183   :  { %v2673_v62 = vpop.eup %2672 }
 0x184   :  { %v736_v5 = vmul.f32 %v2673_v62, %v2671_v47 }
 0x186   :  { %807 = vmatmul.mubr.f32.vlgmr.msra.gmra.mrb[2].mxu0 %v736_v5  ;;  %878 = vmatmul.mubr.f32.vlgmr.msra.gmra.mrb[10].mxu1 %v736_v5 }
 0x187   :  { %2199 = vmatpush1.bf16.msra.mxu0 %v3065_v42  ;;  %2231 = vmatpush1.bf16.msra.mxu1 %v3067_v43 }
 0x188   :  { %2201 = vmatprep.subr.bf16.mxu0 %v3069_v45  ;;  %2233 = vmatprep.subr.bf16.mxu1 %v3071_v49 }
 0x189   :  { %981 = vmatprep.mubr.f32.mxu0 %v2888_v1  ;;  %1052 = vmatprep.mubr.f32.mxu1 %v2888_v1 }
 0x18b   :  { %2203 = vmatpush1.bf16.msra.mxu0 %v3077_v54  ;;  %2235 = vmatpush1.bf16.msra.mxu1 %v3079_v55 }
 0x18c   :  { %2205 = vmatprep.subr.bf16.mxu0 %v3083_v57  ;;  %2237 = vmatprep.subr.bf16.mxu1 %v3086_v61 }
 0x18f   :  { %2207 = vmatpush1.bf16.msra.mxu0 %v3093_v3  ;;  %2239 = vmatpush1.bf16.msra.mxu1 %v3095_v4 }
 0x190   :  { %2209 = vmatprep.subr.bf16.mxu0 %v3099_v6  ;;  %2241 = vmatprep.subr.bf16.mxu1 %v3102_v10 }
 0x193   :  { %2211 = vmatpush1.bf16.msra.mxu0 %v3108_v16  ;;  %2243 = vmatpush1.bf16.msra.mxu1 %v3110_v17 }
 0x194   :  { %2213 = vmatprep.subr.bf16.mxu0 %v3114_v19  ;;  %2245 = vmatprep.subr.bf16.mxu1 %v3117_v24 }
 0x197   :  { %2215 = vmatpush1.bf16.msra.mxu0 %v3123_v34  ;;  %2247 = vmatpush1.bf16.msra.mxu1 %v3125_v35 }
 0x198   :  { %2217 = vmatprep.subr.bf16.mxu0 %v3129_v37  ;;  %2249 = vmatprep.subr.bf16.mxu1 %v3132_v40 }
 0x19b   :  { %2219 = vmatpush1.bf16.msra.mxu0 %v3138_v48  ;;  %2251 = vmatpush1.bf16.msra.mxu1 %v3140_v50 }
 0x19c   :  { %2221 = vmatprep.subr.bf16.mxu0 %v3144_v52  ;;  %2253 = vmatprep.subr.bf16.mxu1 %v3147_v58 }
 0x19f   :  { %2223 = vmatpush1.bf16.msra.mxu0 %v3153_v0  ;;  %2255 = vmatpush1.bf16.msra.mxu1 %v3155_v2 }
 0x1a0   :  { %2225 = vmatprep.subr.bf16.mxu0 %v3159_v7  ;;  %2257 = vmatprep.subr.bf16.mxu1 %v3162_v11 }
 0x1a3   :  { %2227 = vmatpush1.bf16.msra.mxu0 %v3168_v13  ;;  %2259 = vmatpush1.bf16.msra.mxu1 %v3170_v14 }
 0x1a4   :  { %2261 = vmatprep.subr.bf16.mxu0 %v3025_v23  ;;  %2293 = vmatprep.subr.bf16.mxu1 %v3035_v28 }
 0x259   :  { %v808_v8 = vpop.f32.mrb[2].mxu0  ;;  %v879_v26 = vpop.f32.mrb[10].mxu1 }
 0x25a   :  { %v2584_v29 = vadd.f32 %v808_v8, %v3239_v41  ;;  %v810_v33 = vpop.f32.mrb[3].mxu0  ;;  %v881_v38 = vpop.f32.mrb[11].mxu1  ;;  %v2608_v36 = vadd.f32 %v879_v26, %v3248_v9 }
 0x25b   :  { %v2585_v31 = vadd.f32 %v810_v33, %v3241_v44  ;;  %v2609_v53 = vadd.f32 %v881_v38, %v3245_v63 }
 0x25c   :  { %v2022_v46 = vmul.f32 -1.442695, %v2584_v29 }
 0x25d   :  { %v2023_v51 = vmul.f32 -1.442695, %v2585_v31  ;;  %v2024_v56 = vmul.f32 -1.442695, %v2609_v53 }
 0x25e   :  { %2674 = vpow2.f32 %v2022_v46 }
 0x25f   :  { %2676 = vpow2.f32 %v2023_v51 }
 0x260   :  { %2678 = vpow2.f32 %v2024_v56 }
 0x261   :  { %2680 = vtanh.f32 %v2608_v36 }
 0x268   :  { %v2675_v59 = vpop.eup %2674 }
 0x269   :  { %v2677_v60 = vpop.eup %2676  ;;  %v891_v12 = vadd.f32 1.0, %v2675_v59 }
 0x26a   :  { %v897_v47 = vadd.f32 1.0, %v2677_v60  ;;  %v2679_v62 = vpop.eup %2678 }
 0x26b   :  { %2682 = vrcp.f32 %v891_v12  ;;  %v2681_v5 = vpop.eup %2680  ;;  %v904_v31 = vadd.f32 1.0, %v2679_v62 }
 0x26c   :  { %2684 = vrcp.f32 %v897_v47 }
 0x26d   :  { %2686 = vrcp.f32 %v904_v31 }
 0x275   :  { %v2683_v8 = vpop.eup %2682 }
 0x276   :  { %v2685_v29 = vpop.eup %2684  ;;  %v908_v33 = vmul.f32 %v2683_v8, %v2681_v5 }
 0x277   :  { %v907_v46 = vmul.f32 %v2685_v29, %v3251_v39  ;;  %v2687_v26 = vpop.eup %2686 }
 0x279   :  { %v3293_v38 = vadd.f32 %v908_v33, %v907_v46 }
 0x27b   :  { %2688 = vtanh.f32 %v3293_v38 }
 0x285   :  { %v2689_v51 = vpop.eup %2688 }
 0x286   :  { %v911_v53 = vmul.f32 %v2689_v51, %v2687_v26 }
 0x288   :  { %982 = vmatmul.mubr.f32.vlgmr.msra.gmra.mrb[4].mxu0 %v911_v53  ;;  %1053 = vmatmul.mubr.f32.vlgmr.msra.gmra.mrb[12].mxu1 %v911_v53 }
 0x289   :  { %2263 = vmatpush1.bf16.msra.mxu0 %v3065_v42  ;;  %2295 = vmatpush1.bf16.msra.mxu1 %v3067_v43 }
 0x28a   :  { %2265 = vmatprep.subr.bf16.mxu0 %v3069_v45  ;;  %2297 = vmatprep.subr.bf16.mxu1 %v3071_v49 }
 0x28b   :  { %1156 = vmatprep.mubr.f32.mxu0 %v2888_v1  ;;  %1227 = vmatprep.mubr.f32.mxu1 %v2888_v1 }
 0x28d   :  { %2267 = vmatpush1.bf16.msra.mxu0 %v3077_v54  ;;  %2299 = vmatpush1.bf16.msra.mxu1 %v3079_v55 }
 0x28e   :  { %2269 = vmatprep.subr.bf16.mxu0 %v3083_v57  ;;  %2301 = vmatprep.subr.bf16.mxu1 %v3086_v61 }
 0x291   :  { %2271 = vmatpush1.bf16.msra.mxu0 %v3093_v3  ;;  %2303 = vmatpush1.bf16.msra.mxu1 %v3095_v4 }
 0x292   :  { %2273 = vmatprep.subr.bf16.mxu0 %v3099_v6  ;;  %2305 = vmatprep.subr.bf16.mxu1 %v3102_v10 }
 0x295   :  { %2275 = vmatpush1.bf16.msra.mxu0 %v3108_v16  ;;  %2307 = vmatpush1.bf16.msra.mxu1 %v3110_v17 }
 0x296   :  { %2277 = vmatprep.subr.bf16.mxu0 %v3114_v19  ;;  %2309 = vmatprep.subr.bf16.mxu1 %v3117_v24 }
 0x299   :  { %2279 = vmatpush1.bf16.msra.mxu0 %v3123_v34  ;;  %2311 = vmatpush1.bf16.msra.mxu1 %v3125_v35 }
 0x29a   :  { %2281 = vmatprep.subr.bf16.mxu0 %v3129_v37  ;;  %2313 = vmatprep.subr.bf16.mxu1 %v3132_v40 }
 0x29d   :  { %2283 = vmatpush1.bf16.msra.mxu0 %v3138_v48  ;;  %2315 = vmatpush1.bf16.msra.mxu1 %v3140_v50 }
 0x29e   :  { %2285 = vmatprep.subr.bf16.mxu0 %v3144_v52  ;;  %2317 = vmatprep.subr.bf16.mxu1 %v3147_v58 }
 0x2a1   :  { %2287 = vmatpush1.bf16.msra.mxu0 %v3153_v0  ;;  %2319 = vmatpush1.bf16.msra.mxu1 %v3155_v2 }
 0x2a2   :  { %2289 = vmatprep.subr.bf16.mxu0 %v3159_v7  ;;  %2321 = vmatprep.subr.bf16.mxu1 %v3162_v11 }
 0x2a5   :  { %2291 = vmatpush1.bf16.msra.mxu0 %v3168_v13  ;;  %2323 = vmatpush1.bf16.msra.mxu1 %v3170_v14 }
 0x2a6   :  { %2325 = vmatprep.subr.bf16.mxu0 %v3025_v23  ;;  %2357 = vmatprep.subr.bf16.mxu1 %v3035_v28 }
 0x35b   :  { %v983_v39 = vpop.f32.mrb[4].mxu0  ;;  %v1054_v56 = vpop.f32.mrb[12].mxu1 }
 0x35c   :  { %v2586_v36 = vadd.f32 %v983_v39, %v3239_v41  ;;  %v985_v59 = vpop.f32.mrb[5].mxu0  ;;  %v1056_v60 = vpop.f32.mrb[13].mxu1  ;;  %v2610_v29 = vadd.f32 %v1054_v56, %v3248_v9 }
 0x35d   :  { %v2587_v12 = vadd.f32 %v985_v59, %v3241_v44  ;;  %v2611_v5 = vadd.f32 %v1056_v60, %v3245_v63 }
 0x35e   :  { %v2025_v47 = vmul.f32 -1.442695, %v2586_v36 }
 0x35f   :  { %v2026_v62 = vmul.f32 -1.442695, %v2587_v12  ;;  %v2027_v8 = vmul.f32 -1.442695, %v2611_v5 }
 0x360   :  { %2690 = vpow2.f32 %v2025_v47 }
 0x361   :  { %2692 = vpow2.f32 %v2026_v62 }
 0x362   :  { %2694 = vpow2.f32 %v2027_v8 }
 0x363   :  { %2696 = vtanh.f32 %v2610_v29 }
 0x36a   :  { %v2691_v33 = vpop.eup %2690 }
 0x36b   :  { %v2693_v31 = vpop.eup %2692  ;;  %v1066_v46 = vadd.f32 1.0, %v2691_v33 }
 0x36c   :  { %v1072_v26 = vadd.f32 1.0, %v2693_v31  ;;  %v2695_v51 = vpop.eup %2694 }
 0x36d   :  { %2698 = vrcp.f32 %v1066_v46  ;;  %v2697_v53 = vpop.eup %2696  ;;  %v1079_v12 = vadd.f32 1.0, %v2695_v51 }
 0x36e   :  { %2700 = vrcp.f32 %v1072_v26 }
 0x36f   :  { %2702 = vrcp.f32 %v1079_v12 }
 0x377   :  { %v2699_v39 = vpop.eup %2698 }
 0x378   :  { %v2701_v36 = vpop.eup %2700  ;;  %v1083_v59 = vmul.f32 %v2699_v39, %v2697_v53 }
 0x379   :  { %v1082_v47 = vmul.f32 %v2701_v36, %v3293_v38  ;;  %v2703_v56 = vpop.eup %2702 }
 0x37b   :  { %v3335_v60 = vadd.f32 %v1083_v59, %v1082_v47 }
 0x37d   :  { %2704 = vtanh.f32 %v3335_v60 }
 0x387   :  { %v2705_v62 = vpop.eup %2704 }
 0x388   :  { %v1086_v5 = vmul.f32 %v2705_v62, %v2703_v56 }
 0x38a   :  { %1157 = vmatmul.mubr.f32.vlgmr.msra.gmra.mrb[6].mxu0 %v1086_v5  ;;  %1228 = vmatmul.mubr.f32.vlgmr.msra.gmra.mrb[14].mxu1 %v1086_v5 }
 0x38b   :  { %2327 = vmatpush1.bf16.msra.mxu0 %v3065_v42  ;;  %2359 = vmatpush1.bf16.msra.mxu1 %v3067_v43 }
 0x38c   :  { %2329 = vmatprep.subr.bf16.mxu0 %v3069_v45  ;;  %2361 = vmatprep.subr.bf16.mxu1 %v3071_v49 }
 0x38d   :  { %1331 = vmatprep.mubr.f32.mxu0 %v2888_v1  ;;  %1402 = vmatprep.mubr.f32.mxu1 %v2888_v1 }
 0x38f   :  { %2331 = vmatpush1.bf16.msra.mxu0 %v3077_v54  ;;  %2363 = vmatpush1.bf16.msra.mxu1 %v3079_v55 }
 0x390   :  { %2333 = vmatprep.subr.bf16.mxu0 %v3083_v57  ;;  %2365 = vmatprep.subr.bf16.mxu1 %v3086_v61 }
 0x393   :  { %2335 = vmatpush1.bf16.msra.mxu0 %v3093_v3  ;;  %2367 = vmatpush1.bf16.msra.mxu1 %v3095_v4 }
 0x394   :  { %2337 = vmatprep.subr.bf16.mxu0 %v3099_v6  ;;  %2369 = vmatprep.subr.bf16.mxu1 %v3102_v10 }
 0x397   :  { %2339 = vmatpush1.bf16.msra.mxu0 %v3108_v16  ;;  %2371 = vmatpush1.bf16.msra.mxu1 %v3110_v17 }
 0x398   :  { %2341 = vmatprep.subr.bf16.mxu0 %v3114_v19  ;;  %2373 = vmatprep.subr.bf16.mxu1 %v3117_v24 }
 0x39b   :  { %2343 = vmatpush1.bf16.msra.mxu0 %v3123_v34  ;;  %2375 = vmatpush1.bf16.msra.mxu1 %v3125_v35 }
 0x39c   :  { %2345 = vmatprep.subr.bf16.mxu0 %v3129_v37  ;;  %2377 = vmatprep.subr.bf16.mxu1 %v3132_v40 }
 0x39f   :  { %2347 = vmatpush1.bf16.msra.mxu0 %v3138_v48  ;;  %2379 = vmatpush1.bf16.msra.mxu1 %v3140_v50 }
 0x3a0   :  { %2349 = vmatprep.subr.bf16.mxu0 %v3144_v52  ;;  %2381 = vmatprep.subr.bf16.mxu1 %v3147_v58 }
 0x3a3   :  { %2351 = vmatpush1.bf16.msra.mxu0 %v3153_v0  ;;  %2383 = vmatpush1.bf16.msra.mxu1 %v3155_v2 }
 0x3a4   :  { %2353 = vmatprep.subr.bf16.mxu0 %v3159_v7  ;;  %2385 = vmatprep.subr.bf16.mxu1 %v3162_v11 }
 0x3a7   :  { %2355 = vmatpush1.bf16.msra.mxu0 %v3168_v13  ;;  %2387 = vmatpush1.bf16.msra.mxu1 %v3170_v14 }
 0x3a8   :  { %2389 = vmatprep.subr.bf16.mxu0 %v3025_v23  ;;  %2421 = vmatprep.subr.bf16.mxu1 %v3035_v28 }
 0x45d   :  { %v1158_v38 = vpop.f32.mrb[6].mxu0  ;;  %v1229_v8 = vpop.f32.mrb[14].mxu1 }
 0x45e   :  { %v2588_v29 = vadd.f32 %v1158_v38, %v3239_v41  ;;  %v1160_v33 = vpop.f32.mrb[7].mxu0  ;;  %v1231_v31 = vpop.f32.mrb[15].mxu1  ;;  %v2612_v36 = vadd.f32 %v1229_v8, %v3248_v9 }
 0x45f   :  { %v2589_v46 = vadd.f32 %v1160_v33, %v3241_v44  ;;  %v2613_v53 = vadd.f32 %v1231_v31, %v3245_v63 }
 0x460   :  { %v2028_v26 = vmul.f32 -1.442695, %v2588_v29 }
 0x461   :  { %v2029_v51 = vmul.f32 -1.442695, %v2589_v46  ;;  %v2030_v39 = vmul.f32 -1.442695, %v2613_v53 }
 0x462   :  { %2706 = vpow2.f32 %v2028_v26 }
 0x463   :  { %2708 = vpow2.f32 %v2029_v51 }
 0x464   :  { %2710 = vpow2.f32 %v2030_v39  ;;  %v246_v39 = vadd.f32 %v3220_v32, %v3241_v44 }
 0x465   :  { %2712 = vtanh.f32 %v2612_v36 }
 0x46c   :  { %v2707_v59 = vpop.eup %2706 }
 0x46d   :  { %v2709_v12 = vpop.eup %2708  ;;  %v1241_v47 = vadd.f32 1.0, %v2707_v59 }
 0x46e   :  { %v1247_v56 = vadd.f32 1.0, %v2709_v12  ;;  %v2711_v62 = vpop.eup %2710 }
 0x46f   :  { %2714 = vrcp.f32 %v1241_v47  ;;  %v2713_v5 = vpop.eup %2712  ;;  %v1254_v46 = vadd.f32 1.0, %v2711_v62 }
 0x470   :  { %2716 = vrcp.f32 %v1247_v56 }
 0x471   :  { %2718 = vrcp.f32 %v1254_v46 }
 0x479   :  { %v2715_v38 = vpop.eup %2714 }
 0x47a   :  { %v2717_v29 = vpop.eup %2716  ;;  %v1258_v33 = vmul.f32 %v2715_v38, %v2713_v5 }
 0x47b   :  { %v1257_v26 = vmul.f32 %v2717_v29, %v3335_v60  ;;  %v2719_v8 = vpop.eup %2718  ;;  %v244_v60 = vadd.f32 %v3218_v30, %v3239_v41 }
 0x47d   :  { %v3377_v31 = vadd.f32 %v1258_v33, %v1257_v26 }
 0x47f   :  { %2720 = vtanh.f32 %v3377_v31 }
 0x489   :  { %v2721_v51 = vpop.eup %2720 }
 0x48a   :  { %v1261_v53 = vmul.f32 %v2721_v51, %v2719_v8 }
 0x48c   :  { %1332 = vmatmul.mubr.f32.vlgmr.msra.gmra.mrb[10].mxu0 %v1261_v53  ;;  %1403 = vmatmul.mubr.f32.vlgmr.msra.gmra.mrb[16].mxu1 %v1261_v53 }
 0x48d   :  { %2391 = vmatpush1.bf16.msra.mxu0 %v3065_v42  ;;  %2423 = vmatpush1.bf16.msra.mxu1 %v3067_v43 }
 0x48e   :  { %2393 = vmatprep.subr.bf16.mxu0 %v3069_v45  ;;  %2425 = vmatprep.subr.bf16.mxu1 %v3071_v49 }
 0x48f   :  { %1506 = vmatprep.mubr.f32.mxu0 %v2888_v1  ;;  %1577 = vmatprep.mubr.f32.mxu1 %v2888_v1 }
 0x491   :  { %2395 = vmatpush1.bf16.msra.mxu0 %v3077_v54  ;;  %2427 = vmatpush1.bf16.msra.mxu1 %v3079_v55 }
 0x492   :  { %2397 = vmatprep.subr.bf16.mxu0 %v3083_v57  ;;  %2429 = vmatprep.subr.bf16.mxu1 %v3086_v61 }
 0x495   :  { %2399 = vmatpush1.bf16.msra.mxu0 %v3093_v3  ;;  %2431 = vmatpush1.bf16.msra.mxu1 %v3095_v4 }
 0x496   :  { %2401 = vmatprep.subr.bf16.mxu0 %v3099_v6  ;;  %2433 = vmatprep.subr.bf16.mxu1 %v3102_v10 }
 0x499   :  { %2403 = vmatpush1.bf16.msra.mxu0 %v3108_v16  ;;  %2435 = vmatpush1.bf16.msra.mxu1 %v3110_v17 }
 0x49a   :  { %2405 = vmatprep.subr.bf16.mxu0 %v3114_v19  ;;  %2437 = vmatprep.subr.bf16.mxu1 %v3117_v24 }
 0x49d   :  { %2407 = vmatpush1.bf16.msra.mxu0 %v3123_v34  ;;  %2439 = vmatpush1.bf16.msra.mxu1 %v3125_v35 }
 0x49e   :  { %2409 = vmatprep.subr.bf16.mxu0 %v3129_v37  ;;  %2441 = vmatprep.subr.bf16.mxu1 %v3132_v40 }
 0x4a1   :  { %2411 = vmatpush1.bf16.msra.mxu0 %v3138_v48  ;;  %2443 = vmatpush1.bf16.msra.mxu1 %v3140_v50 }
 0x4a2   :  { %2413 = vmatprep.subr.bf16.mxu0 %v3144_v52  ;;  %2445 = vmatprep.subr.bf16.mxu1 %v3147_v58 }
 0x4a5   :  { %2415 = vmatpush1.bf16.msra.mxu0 %v3153_v0  ;;  %2447 = vmatpush1.bf16.msra.mxu1 %v3155_v2 }
 0x4a6   :  { %2417 = vmatprep.subr.bf16.mxu0 %v3159_v7  ;;  %2449 = vmatprep.subr.bf16.mxu1 %v3162_v11 }
 0x4a9   :  { %2419 = vmatpush1.bf16.msra.mxu0 %v3168_v13  ;;  %2451 = vmatpush1.bf16.msra.mxu1 %v3170_v14 }
 0x4aa   :  { %2453 = vmatprep.subr.bf16.mxu0 %v3025_v23  ;;  %2485 = vmatprep.subr.bf16.mxu1 %v3035_v28 }
 0x55f   :  { %v1333_v36 = vpop.f32.mrb[10].mxu0  ;;  %v1404_v59 = vpop.f32.mrb[16].mxu1 }
 0x560   :  { %v1409_v12 = vadd.f32 %v1333_v36, %v244_v60  ;;  %v1335_v47 = vpop.f32.mrb[11].mxu0  ;;  %v1406_v56 = vpop.f32.mrb[17].mxu1  ;;  %v2614_v46 = vadd.f32 %v1404_v59, %v3248_v9 }
 0x561   :  { %v1410_v62 = vadd.f32 %v1335_v47, %v246_v39  ;;  %v2615_v29 = vadd.f32 %v1406_v56, %v3245_v63 }
 0x562   :  { %v2031_v5 = vmul.f32 -1.442695, %v1409_v12 }
 0x563   :  { %v2032_v38 = vmul.f32 -1.442695, %v1410_v62  ;;  %v2033_v33 = vmul.f32 -1.442695, %v2615_v29 }
 0x564   :  { %2722 = vpow2.f32 %v2031_v5 }
 0x565   :  { %2724 = vpow2.f32 %v2032_v38  ;;  %v252_v38 = vadd.f32 %v3224_v18, %v3241_v44 }
 0x566   :  { %2726 = vpow2.f32 %v2033_v33 }
 0x567   :  { %2728 = vtanh.f32 %v2614_v46 }
 0x56e   :  { %v2723_v26 = vpop.eup %2722 }
 0x56f   :  { %v2725_v30 = vpop.eup %2724  ;;  %v1416_v8 = vadd.f32 1.0, %v2723_v26 }
 0x570   :  { %v1422_v32 = vadd.f32 1.0, %v2725_v30  ;;  %v2727_v51 = vpop.eup %2726 }
 0x571   :  { %2730 = vrcp.f32 %v1416_v8  ;;  %v2729_v53 = vpop.eup %2728  ;;  %v1429_v12 = vadd.f32 1.0, %v2727_v51 }
 0x572   :  { %2732 = vrcp.f32 %v1422_v32 }
 0x573   :  { %2734 = vrcp.f32 %v1429_v12 }
 0x57b   :  { %v2731_v60 = vpop.eup %2730 }
 0x57c   :  { %v2733_v39 = vpop.eup %2732  ;;  %v1433_v36 = vmul.f32 %v2731_v60, %v2729_v53 }
 0x57d   :  { %v1432_v47 = vmul.f32 %v2733_v39, %v3377_v31  ;;  %v2735_v59 = vpop.eup %2734  ;;  %v250_v31 = vadd.f32 %v3222_v15, %v3239_v41 }
 0x57f   :  { %v3421_v56 = vadd.f32 %v1433_v36, %v1432_v47 }
 0x581   :  { %2736 = vtanh.f32 %v3421_v56 }
 0x58b   :  { %v2737_v62 = vpop.eup %2736 }
 0x58c   :  { %v1436_v5 = vmul.f32 %v2737_v62, %v2735_v59 }
 0x58e   :  { %1507 = vmatmul.mubr.f32.vlgmr.msra.gmra.mrb[12].mxu0 %v1436_v5  ;;  %1578 = vmatmul.mubr.f32.vlgmr.msra.gmra.mrb[18].mxu1 %v1436_v5 }
 0x58f   :  { %2455 = vmatpush1.bf16.msra.mxu0 %v3065_v42  ;;  %2487 = vmatpush1.bf16.msra.mxu1 %v3067_v43 }
 0x590   :  { %2457 = vmatprep.subr.bf16.mxu0 %v3069_v45  ;;  %2489 = vmatprep.subr.bf16.mxu1 %v3071_v49 }
 0x591   :  { %1681 = vmatprep.mubr.f32.mxu0 %v2888_v1  ;;  %1752 = vmatprep.mubr.f32.mxu1 %v2888_v1 }
 0x593   :  { %2459 = vmatpush1.bf16.msra.mxu0 %v3077_v54  ;;  %2491 = vmatpush1.bf16.msra.mxu1 %v3079_v55 }
 0x594   :  { %2461 = vmatprep.subr.bf16.mxu0 %v3083_v57  ;;  %2493 = vmatprep.subr.bf16.mxu1 %v3086_v61 }
 0x597   :  { %2463 = vmatpush1.bf16.msra.mxu0 %v3093_v3  ;;  %2495 = vmatpush1.bf16.msra.mxu1 %v3095_v4 }
 0x598   :  { %2465 = vmatprep.subr.bf16.mxu0 %v3099_v6  ;;  %2497 = vmatprep.subr.bf16.mxu1 %v3102_v10 }
 0x59b   :  { %2467 = vmatpush1.bf16.msra.mxu0 %v3108_v16  ;;  %2499 = vmatpush1.bf16.msra.mxu1 %v3110_v17 }
 0x59c   :  { %2469 = vmatprep.subr.bf16.mxu0 %v3114_v19  ;;  %2501 = vmatprep.subr.bf16.mxu1 %v3117_v24 }
 0x59f   :  { %2471 = vmatpush1.bf16.msra.mxu0 %v3123_v34  ;;  %2503 = vmatpush1.bf16.msra.mxu1 %v3125_v35 }
 0x5a0   :  { %2473 = vmatprep.subr.bf16.mxu0 %v3129_v37  ;;  %2505 = vmatprep.subr.bf16.mxu1 %v3132_v40 }
 0x5a3   :  { %2475 = vmatpush1.bf16.msra.mxu0 %v3138_v48  ;;  %2507 = vmatpush1.bf16.msra.mxu1 %v3140_v50 }
 0x5a4   :  { %2477 = vmatprep.subr.bf16.mxu0 %v3144_v52  ;;  %2509 = vmatprep.subr.bf16.mxu1 %v3147_v58 }
 0x5a7   :  { %2479 = vmatpush1.bf16.msra.mxu0 %v3153_v0  ;;  %2511 = vmatpush1.bf16.msra.mxu1 %v3155_v2 }
 0x5a8   :  { %2481 = vmatprep.subr.bf16.mxu0 %v3159_v7  ;;  %2513 = vmatprep.subr.bf16.mxu1 %v3162_v11 }
 0x5ab   :  { %2483 = vmatpush1.bf16.msra.mxu0 %v3168_v13  ;;  %2515 = vmatpush1.bf16.msra.mxu1 %v3170_v14 }
 0x5ac   :  { %2517 = vmatprep.subr.bf16.mxu0 %v3025_v23  ;;  %2549 = vmatprep.subr.bf16.mxu1 %v3035_v28 }
 0x661   :  { %v1508_v29 = vpop.f32.mrb[12].mxu0  ;;  %v1579_v33 = vpop.f32.mrb[18].mxu1 }
 0x662   :  { %v1584_v46 = vadd.f32 %v1508_v29, %v250_v31  ;;  %v1510_v26 = vpop.f32.mrb[13].mxu0  ;;  %v1581_v30 = vpop.f32.mrb[19].mxu1  ;;  %v2616_v28 = vadd.f32 %v1579_v33, %v3248_v9 }
 0x663   :  { %v1585_v8 = vadd.f32 %v1510_v26, %v252_v38  ;;  %v2617_v23 = vadd.f32 %v1581_v30, %v3245_v63 }
 0x664   :  { %v2034_v32 = vmul.f32 -1.442695, %v1584_v46 }
 0x665   :  { %v2035_v51 = vmul.f32 -1.442695, %v1585_v8  ;;  %v2036_v53 = vmul.f32 -1.442695, %v2617_v23 }
 0x666   :  { %2738 = vpow2.f32 %v2034_v32 }
 0x667   :  { %2740 = vpow2.f32 %v2035_v51 }
 0x668   :  { %2742 = vpow2.f32 %v2036_v53 }
 0x669   :  { %2744 = vtanh.f32 %v2616_v28 }
 0x670   :  { %v2739_v60 = vpop.eup %2738 }
 0x671   :  { %v2741_v15 = vpop.eup %2740  ;;  %v1591_v39 = vadd.f32 1.0, %v2739_v60 }
 0x672   :  { %v1597_v18 = vadd.f32 1.0, %v2741_v15  ;;  %v2743_v36 = vpop.eup %2742 }
 0x673   :  { %2746 = vrcp.f32 %v1591_v39  ;;  %v2745_v12 = vpop.eup %2744  ;;  %v1604_v5 = vadd.f32 1.0, %v2743_v36 }
 0x674   :  { %2748 = vrcp.f32 %v1597_v18 }
 0x675   :  { %2750 = vrcp.f32 %v1604_v5 }
 0x67d   :  { %v2747_v47 = vpop.eup %2746 }
 0x67e   :  { %v2749_v59 = vpop.eup %2748  ;;  %v1608_v62 = vmul.f32 %v2747_v47, %v2745_v12 }
 0x67f   :  { %v1607_v31 = vmul.f32 %v2749_v59, %v3421_v56  ;;  %v2751_v29 = vpop.eup %2750  ;;  %v2016_v59 = vld [vmem:[%s3532_s6] ss:$0 sm:$0xff] }
 0x681   :  { %v3465_v38 = vadd.f32 %v1608_v62, %v1607_v31  ;;  %v2043_v62 = vld [vmem:[%s3533_s7] ss:$0 sm:$0xff]  ;;  %v496_v31 = vadd.f32 %v2016_v59, %v3234_v27 }
 0x683   :  { %2752 = vtanh.f32 %v3465_v38 }
 0x68d   :  { %v2753_v33 = vpop.eup %2752 }
 0x68e   :  { %v1611_v46 = vmul.f32 %v2753_v33, %v2751_v29  ;;  %v2044_v29 = vld [vmem:[%s3534_s8] ss:$0 sm:$0xff] }
 0x68f   :  { %v1979_v33 = vmul.f32 %v2044_v29, %v496_v31 }
 0x690   :  { %1682 = vmatmul.mubr.f32.vlgmr.msra.gmra.mrb[14].mxu0 %v1611_v46  ;;  %1753 = vmatmul.mubr.f32.vlgmr.msra.gmra.mrb[20].mxu1 %v1611_v46 }
 0x691   :  { %2519 = vmatpush1.bf16.msra.mxu0 %v3065_v42  ;;  %2551 = vmatpush1.bf16.msra.mxu1 %v3067_v43  ;;  %v258_v42 = vadd.f32 %v3228_v21, %v3241_v44 }
 0x692   :  { %2521 = vmatprep.subr.bf16.mxu0 %v3069_v45  ;;  %2553 = vmatprep.subr.bf16.mxu1 %v3071_v49 }
 0x693   :  { %1856 = vmatprep.mubr.f32.mxu0 %v2888_v1  ;;  %1927 = vmatprep.mubr.f32.mxu1 %v2888_v1  ;;  %v256_v1 = vadd.f32 %v3226_v20, %v3239_v41 }
 0x695   :  { %2523 = vmatpush1.bf16.msra.mxu0 %v3077_v54  ;;  %2555 = vmatpush1.bf16.msra.mxu1 %v3079_v55 }
 0x696   :  { %2525 = vmatprep.subr.bf16.mxu0 %v3083_v57  ;;  %2557 = vmatprep.subr.bf16.mxu1 %v3086_v61 }
 0x699   :  { %2527 = vmatpush1.bf16.msra.mxu0 %v3093_v3  ;;  %2559 = vmatpush1.bf16.msra.mxu1 %v3095_v4 }
 0x69a   :  { %2529 = vmatprep.subr.bf16.mxu0 %v3099_v6  ;;  %2561 = vmatprep.subr.bf16.mxu1 %v3102_v10 }
 0x69d   :  { %2531 = vmatpush1.bf16.msra.mxu0 %v3108_v16  ;;  %2563 = vmatpush1.bf16.msra.mxu1 %v3110_v17 }
 0x69e   :  { %2533 = vmatprep.subr.bf16.mxu0 %v3114_v19  ;;  %2565 = vmatprep.subr.bf16.mxu1 %v3117_v24 }
 0x6a1   :  { %2535 = vmatpush1.bf16.msra.mxu0 %v3123_v34  ;;  %2567 = vmatpush1.bf16.msra.mxu1 %v3125_v35 }
 0x6a2   :  { %2537 = vmatprep.subr.bf16.mxu0 %v3129_v37  ;;  %2569 = vmatprep.subr.bf16.mxu1 %v3132_v40 }
 0x6a5   :  { %2539 = vmatpush1.bf16.msra.mxu0 %v3138_v48  ;;  %2571 = vmatpush1.bf16.msra.mxu1 %v3140_v50 }
 0x6a6   :  { %2541 = vmatprep.subr.bf16.mxu0 %v3144_v52  ;;  %2573 = vmatprep.subr.bf16.mxu1 %v3147_v58 }
 0x6a9   :  { %2543 = vmatpush1.bf16.msra.mxu0 %v3153_v0  ;;  %2575 = vmatpush1.bf16.msra.mxu1 %v3155_v2 }
 0x6aa   :  { %2545 = vmatprep.subr.bf16.mxu0 %v3159_v7  ;;  %2577 = vmatprep.subr.bf16.mxu1 %v3162_v11  ;;  %v262_v11 = vadd.f32 %v3230_v22, %v3239_v41 }
 0x6ad   :  { %2547 = vmatpush1.bf16.msra.mxu0 %v3168_v13  ;;  %2579 = vmatpush1.bf16.msra.mxu1 %v3170_v14  ;;  %v264_v13 = vadd.f32 %v3232_v25, %v3241_v44 }
 0x763   :  { %v1683_v43 = vpop.f32.mrb[14].mxu0  ;;  %v1754_v45 = vpop.f32.mrb[20].mxu1 }
 0x764   :  { %v1759_v49 = vadd.f32 %v1683_v43, %v256_v1  ;;  %v1685_v54 = vpop.f32.mrb[15].mxu0  ;;  %v1756_v55 = vpop.f32.mrb[21].mxu1  ;;  %v2618_v10 = vadd.f32 %v1754_v45, %v3248_v9  ;;  %v2045_v1 = vld [vmem:[#allocation3] ss:$0 sm:$0xff] }
 0x765   :  { %v1760_v57 = vadd.f32 %v1685_v54, %v258_v42  ;;  %v2619_v4 = vadd.f32 %v1756_v55, %v3245_v63 }
 0x766   :  { %v2037_v61 = vmul.f32 -1.442695, %v1759_v49 }
 0x767   :  { %v2038_v3 = vmul.f32 -1.442695, %v1760_v57  ;;  %v2039_v6 = vmul.f32 -1.442695, %v2619_v4 }
 0x768   :  { %2754 = vpow2.f32 %v2037_v61 }
 0x769   :  { %2756 = vpow2.f32 %v2038_v3 }
 0x76a   :  { %2758 = vpow2.f32 %v2039_v6 }
 0x76b   :  { %2760 = vtanh.f32 %v2618_v10 }
 0x772   :  { %v2755_v16 = vpop.eup %2754 }
 0x773   :  { %v2757_v17 = vpop.eup %2756  ;;  %v1766_v19 = vadd.f32 1.0, %v2755_v16 }
 0x774   :  { %v1772_v24 = vadd.f32 1.0, %v2757_v17  ;;  %v2759_v34 = vpop.eup %2758 }
 0x775   :  { %2762 = vrcp.f32 %v1766_v19  ;;  %v2761_v35 = vpop.eup %2760  ;;  %v1779_v50 = vadd.f32 1.0, %v2759_v34 }
 0x776   :  { %2764 = vrcp.f32 %v1772_v24 }
 0x777   :  { %2766 = vrcp.f32 %v1779_v50 }
 0x77f   :  { %v2763_v37 = vpop.eup %2762 }
 0x780   :  { %v2765_v40 = vpop.eup %2764  ;;  %v1783_v48 = vmul.f32 %v2763_v37, %v2761_v35 }
 0x781   :  { %v1782_v52 = vmul.f32 %v2765_v40, %v3465_v38  ;;  %v2767_v0 = vpop.eup %2766 }
 0x783   :  { %v1784_v58 = vadd.f32 %v1783_v48, %v1782_v52 }
 0x785   :  { %2768 = vtanh.f32 %v1784_v58 }
 0x78f   :  { %v2769_v2 = vpop.eup %2768 }
 0x790   :  { %v1786_v7 = vmul.f32 %v2769_v2, %v2767_v0 }
 0x792   :  { %1857 = vmatmul.mubr.f32.vlgmr.msra.gmra.mrb[16].mxu0 %v1786_v7  ;;  %1928 = vmatmul.mubr.f32.vlgmr.msra.gmra.mrb[22].mxu1 %v1786_v7 }
 0x865   :  { %v1858_v14 = vpop.f32.mrb[16].mxu0  ;;  %v1929_v20 = vpop.f32.mrb[22].mxu1 }
 0x866   :  { %v1934_v21 = vadd.f32 %v1858_v14, %v262_v11  ;;  %v1860_v56 = vpop.f32.mrb[17].mxu0  ;;  %v1931_v26 = vpop.f32.mrb[23].mxu1  ;;  %v2620_v53 = vadd.f32 %v1929_v20, %v3248_v9 }
 0x867   :  { %v1935_v30 = vadd.f32 %v1860_v56, %v264_v13  ;;  %v2621_v51 = vadd.f32 %v1931_v26, %v3245_v63 }
 0x868   :  { %v2040_v8 = vmul.f32 -1.442695, %v1934_v21 }
 0x869   :  { %v2041_v32 = vmul.f32 -1.442695, %v1935_v30  ;;  %v2042_v23 = vmul.f32 -1.442695, %v2621_v51 }
 0x86a   :  { %2770 = vpow2.f32 %v2040_v8 }
 0x86b   :  { %2772 = vpow2.f32 %v2041_v32 }
 0x86c   :  { %2774 = vpow2.f32 %v2042_v23 }
 0x86d   :  { %2776 = vtanh.f32 %v2620_v53 }
 0x874   :  { %v2771_v28 = vpop.eup %2770 }
 0x875   :  { %v2773_v22 = vpop.eup %2772  ;;  %v1941_v41 = vadd.f32 1.0, %v2771_v28 }
 0x876   :  { %v1947_v25 = vadd.f32 1.0, %v2773_v22  ;;  %v2775_v44 = vpop.eup %2774 }
 0x877   :  { %2778 = vrcp.f32 %v1941_v41  ;;  %v2777_v60 = vpop.eup %2776  ;;  %v1954_v36 = vadd.f32 1.0, %v2775_v44 }
 0x878   :  { %2780 = vrcp.f32 %v1947_v25 }
 0x879   :  { %2782 = vrcp.f32 %v1954_v36 }
 0x881   :  { %v2779_v15 = vpop.eup %2778 }
 0x882   :  { %v2781_v39 = vpop.eup %2780  ;;  %v1958_v18 = vmul.f32 %v2779_v15, %v2777_v60 }
 0x883   :  { %v1957_v12 = vmul.f32 %v2781_v39, %v1784_v58  ;;  %v2783_v63 = vpop.eup %2782 }
 0x885   :  { %v1959_v47 = vadd.f32 %v1958_v18, %v1957_v12 }
 0x887   :  { %2784 = vtanh.f32 %v1959_v47 }
 0x891   :  { %v2785_v9 = vpop.eup %2784 }
 0x892   :  { %v1961_v5 = vmul.f32 %v2785_v9, %v2783_v63 }
 0x894   :  { %v1969_v38 = vmul.f32 %v2043_v62, %v1961_v5 }
 0x896   :  { %1970 = vadd.xlane.f32.xlu0 %v1969_v38 }
 0x89a   :  { %1980 = vadd.xlane.f32.xlu0 %v1979_v33 }
 0x923   :  { %v1971_v46 = vpop.xlane.xlu0 %1970 }
 0x927   :  { %v1981_v42 = vpop.xlane.xlu0 %1980 }
 0x928   :  { %v1982_v43 = vadd.f32 %v1981_v42, %v1971_v46 }
 0x92a   :  { %v1990_v45 = vadd.f32 %v2045_v1, %v1982_v43 }
 0x92c   :  { %1992 = vst.msk [vmem:[%s3536_s10] sm:$0xff] %vm1991_vm6, %v1990_v45 }
 0x92d   :  { %1997 = vsyncpa [#allocation5], 1 }
 0x92e   :  { %1998 = vsyncpa [#allocation7], 1 }
 0x92f   :  { %1999 = vsyncpa [#allocation10], 1 }

</bundles_post_ra>
